<compile_context>
chip_gen: v7x
topology: tpu7x:2x2x1
jax: 0.10.0
libtpu: 0.0.40
codegen_flags: <defaults>
</compile_context>

<pallas_src>
import functools
import numpy as np
import jax
import jax.numpy as jnp
from jax.experimental import pallas as pl
from jax.experimental.pallas import tpu as pltpu

LN_EPS = 1e-5


def _layernorm(x, g, b):
    x32 = x.astype(jnp.float32)
    mu = jnp.mean(x32, axis=-1, keepdims=True)
    var = jnp.mean((x32 - mu) ** 2, axis=-1, keepdims=True)
    return (x32 - mu) * jax.lax.rsqrt(var + LN_EPS) * g + b


# ----------------------------------------------------------------------------
# Fused decoder kernel: one grid step = one batch row, blocks unrolled inside.
# ----------------------------------------------------------------------------
def _decoder_kernel(H, C, n_blocks,
                    x0_ref, m_ref, segwh_ref, seghw_ref,
                    k_ref, v_ref, win_ref, wout_ref, wfc_ref, wproj_ref,
                    vec_ref, lnp_ref, proj_ref,
                    vf_ref, logits_ref):
    W = H * C
    L = m_ref.shape[1]
    inv_sqrt_c = 1.0 / float(C) ** 0.5
    bf16 = jnp.bfloat16

    x = x0_ref[...]                       # (1, W) f32 : ln_pre(cls), shared over batch
    maskf = m_ref[0]                      # (L, 1) f32 : 1 = valid key, 0 = padded
    valid = maskf > 0.5
    seg_wh = segwh_ref[...]               # (W, H) bf16 : channel -> head reduction
    seg_hw = seghw_ref[...]               # (H, W) bf16 : head -> channel broadcast

    # packed per-block vector layout: [ln1_g|ln1_b|b_in(2W)|b_out|ln2_g|ln2_b|b_fc(4W)|b_proj]
    o = (0, W, 2 * W, 4 * W, 5 * W, 6 * W, 7 * W, 11 * W, 12 * W)

    for b in range(n_blocks):             # static unroll (tiny block count)
        vec = vec_ref[b]                  # (1, 12W) f32 — single packed DMA
        ln1g, ln1b = vec[:, o[0]:o[1]], vec[:, o[1]:o[2]]
        b_in, b_out = vec[:, o[2]:o[3]], vec[:, o[3]:o[4]]
        ln2g, ln2b = vec[:, o[4]:o[5]], vec[:, o[5]:o[6]]
        b_fc, b_prj = vec[:, o[6]:o[7]], vec[:, o[7]:o[8]]

        k = k_ref[b, 0]                   # (L, W) bf16 (never upcast wholesale)
        v = v_ref[b, 0]                   # (L, W) bf16

        # ---- attention: x = x + out_proj(aff @ v) ---------------------------
        xn = _layernorm(x, ln1g, ln1b)                                  # (1, W)
        qq = jnp.dot(xn.astype(bf16), win_ref[b],
                     preferred_element_type=jnp.float32) + b_in         # (1, 2W)
        q1 = qq[:, :W]                    # softmax queries (head-major lanes)
        q2 = qq[:, W:]                    # coda queries

        # per-head reductions (q1·k, q2·k, |q2-k| L1) as one row-stacked
        # (3L, W) @ (W, H) matmul against a shared 0/1 segment matrix.
        feat = jnp.concatenate([k * q1, k * q2, jnp.abs(q2 - k)], axis=0)
        scores = jnp.dot(feat.astype(bf16), seg_wh,
                         preferred_element_type=jnp.float32) * inv_sqrt_c
        s1 = scores[:L]                   # softmax logits           (L, H)
        s2 = scores[L:2 * L]              # coda similarity          (L, H)
        gd = scores[2 * L:]               # coda L1 distance / sqrtC (L, H)

        # NOTE: like the PyTorch module, a batch row with ALL frames masked
        # would give NaN (softmax over an empty key set); >=1 valid frame assumed.
        s1 = jnp.where(valid, s1, -jnp.inf)
        mx = jnp.max(s1, axis=0, keepdims=True)
        e = jnp.exp(s1 - mx)
        p_soft = e / jnp.sum(e, axis=0, keepdims=True)
        p_coda = jnp.tanh(s2) * (2.0 * jax.nn.sigmoid(-gd)) * maskf
        aff = 0.5 * (p_soft + p_coda)                                   # (L, H)

        # expand per-head weights to per-channel, weight v, reduce over keys
        aff_exp = jnp.dot(aff.astype(bf16), seg_hw,
                          preferred_element_type=jnp.float32)           # (L, W)
        mix = jnp.sum(aff_exp * v, axis=0, keepdims=True)               # (1, W)
        x = x + jnp.dot(mix.astype(bf16), wout_ref[b],
                        preferred_element_type=jnp.float32) + b_out

        # ---- MLP: x = x + c_proj(quick_gelu(c_fc(ln_2(x)))) -----------------
        # TODO(synk): nn.Dropout layers are treated as identity (eval-mode semantics).
        xn2 = _layernorm(x, ln2g, ln2b)
        h = jnp.dot(xn2.astype(bf16), wfc_ref[b],
                    preferred_element_type=jnp.float32) + b_fc
        h = h * jax.nn.sigmoid(1.702 * h)
        x = x + jnp.dot(h.astype(bf16), wproj_ref[b],
                        preferred_element_type=jnp.float32) + b_prj

    # ---- fused epilogue: ln_post + concatenated task projections ------------
    lnp = lnp_ref[...]                                                  # (1, 2W)
    vfeat = _layernorm(x, lnp[:, :W], lnp[:, W:])
    vf_ref[...] = vfeat.reshape(1, 1, W)
    logits_ref[...] = jnp.dot(vfeat, proj_ref[...],
                              preferred_element_type=jnp.float32).reshape(1, 1, -1)


# ----------------------------------------------------------------------------
# Forward wrapper (one pallas_call for the whole decoder)
# ----------------------------------------------------------------------------
def decoder_forward_pallas(prep, k_all, v_all, maskf, H, C):
    n_blocks, N, L, W = k_all.shape
    F4 = prep["wfc"].shape[-1]
    Dt = prep["proj"].shape[-1]
    Kv = prep["vec"].shape[-1]

    def const(shape):
        zeros = (0,) * len(shape)
        return pl.BlockSpec(shape, lambda n, _z=zeros: _z)

    grid_spec = pltpu.PrefetchScalarGridSpec(
        num_scalar_prefetch=0,
        grid=(N,),                                   # batch axis -> megacore on v7x
        in_specs=[
            const((1, W)),                                         # x0 = ln_pre(cls)
            pl.BlockSpec((1, L, 1), lambda n: (n, 0, 0)),          # key mask (per row)
            const((W, H)),                                         # segment  W -> H
            const((H, W)),                                         # segment  H -> W
            pl.BlockSpec((n_blocks, 1, L, W), lambda n: (0, n, 0, 0)),  # k (bf16)
            pl.BlockSpec((n_blocks, 1, L, W), lambda n: (0, n, 0, 0)),  # v (bf16)
            const((n_blocks, W, 2 * W)),                           # fused in_proj (bf16)
            const((n_blocks, W, W)),                               # out_proj      (bf16)
            const((n_blocks, W, F4)),                              # c_fc          (bf16)
            const((n_blocks, F4, W)),                              # c_proj        (bf16)
            const((n_blocks, 1, Kv)),                              # packed LN/bias vectors
            const((1, 2 * W)),                                     # ln_post gamma|beta
            const((W, Dt)),                                        # concatenated task proj
        ],
        out_specs=(pl.BlockSpec((1, 1, W), lambda n: (n, 0, 0)),
                   pl.BlockSpec((1, 1, Dt), lambda n: (n, 0, 0))),
    )

    vf3, logits3 = pl.pallas_call(
        functools.partial(_decoder_kernel, H, C, n_blocks),
        out_shape=(jax.ShapeDtypeStruct((N, 1, W), jnp.float32),
                   jax.ShapeDtypeStruct((N, 1, Dt), jnp.float32)),
        grid_spec=grid_spec,
        compiler_params=pltpu.CompilerParams(
            dimension_semantics=("parallel",)),
        # NOTE: at production widths, restore the block-pipelined grid, set
        # vmem_limit_bytes explicitly (v7x: 64 MiB/TC) and tune pl.Buffered depth.
    )(prep["x0"], maskf, prep["segWH"], prep["segHW"], k_all, v_all,
      prep["win"], prep["wout"], prep["wfc"], prep["wproj"],
      prep["vec"], prep["lnpost"], prep["proj"])

    vf = vf3[:, 0]
    logits_cat = logits3[:, 0]
    logits = [logits_cat[:, s:e] for (s, e) in prep["proj_splits"]]
    return logits, vf


# ----------------------------------------------------------------------------
# One-time parameter / input conversion (hoisted off the forward path)
# ----------------------------------------------------------------------------
def init_torch_style_params(key, W, H, C, n_blocks, out_dims):
    """Deterministic synthetic parameters, stored in PyTorch conventions.
    Big weights are rounded to bf16-representable values so kernel (bf16
    storage) and reference (f32) consume identical numbers."""
    scale = W ** (-0.5)
    keys = iter(jax.random.split(key, 16 + 12 * n_blocks + len(out_dims)))
    q16 = lambda a: a.astype(jnp.bfloat16).astype(jnp.float32)

    def nrm(shape, s=0.05):
        return (s * jax.random.normal(next(keys), shape)).astype(jnp.float32)

    params = {
        "cls": (scale * jax.random.normal(next(keys), (W,))).astype(jnp.float32),
        "ln_pre_g": 1.0 + nrm((W,), 0.1), "ln_pre_b": nrm((W,), 0.1),
        "ln_post_g": 1.0 + nrm((W,), 0.1), "ln_post_b": nrm((W,), 0.1),
        "projs": [(scale * jax.random.normal(next(keys), (W, d))).astype(jnp.float32)
                  for d in out_dims],
        "blocks": [],
    }
    for _ in range(n_blocks):
        params["blocks"].append({
            "ln1_g": 1.0 + nrm((W,), 0.1), "ln1_b": nrm((W,), 0.1),
            "w_in": q16(nrm((2 * W, W))), "b_in": nrm((2 * W,)),
            "w_out": q16(nrm((W, W))), "b_out": nrm((W,)),
            "ln2_g": 1.0 + nrm((W,), 0.1), "ln2_b": nrm((W,), 0.1),
            "w_fc": q16(nrm((4 * W, W))), "b_fc": nrm((4 * W,)),
            "w_proj": q16(nrm((W, 4 * W))), "b_proj": nrm((W,)),
        })
    return params


def prepare_decoder_params(tparams, H, C):
    """PyTorch layout -> kernel layout, done ONCE.
    in_proj is permuted so q1 occupies the first W output lanes (head-major)
    and q2 the second W; large weights stored bf16; per-block vectors packed."""
    W = H * C
    blocks = tparams["blocks"]
    twoC = 2 * C
    src = np.zeros(2 * W, dtype=np.int64)
    for p in range(W):
        h, c = divmod(p, C)
        src[p] = h * twoC + c            # q1 columns
        src[W + p] = h * twoC + C + c    # q2 columns
    src = jnp.asarray(src)

    def stack(fn, dtype=jnp.float32):
        return jnp.stack([fn(bp) for bp in blocks]).astype(dtype)

    prep = {
        "win":  stack(lambda bp: bp["w_in"].T[:, src], jnp.bfloat16),
        "wout": stack(lambda bp: bp["w_out"].T, jnp.bfloat16),
        "wfc":  stack(lambda bp: bp["w_fc"].T, jnp.bfloat16),
        "wproj": stack(lambda bp: bp["w_proj"].T, jnp.bfloat16),
        # packed per-block vectors: [ln1_g|ln1_b|b_in(2W)|b_out|ln2_g|ln2_b|b_fc(4W)|b_proj]
        "vec": stack(lambda bp: jnp.concatenate(
            [bp["ln1_g"], bp["ln1_b"], bp["b_in"][src], bp["b_out"],
             bp["ln2_g"], bp["ln2_b"], bp["b_fc"], bp["b_proj"]]).reshape(1, -1)),
        "lnpost": jnp.concatenate([tparams["ln_post_g"],
                                   tparams["ln_post_b"]]).reshape(1, 2 * W),
    }
    # ln_pre(class_embedding) is input independent -> constant row.
    prep["x0"] = _layernorm(tparams["cls"].reshape(1, W),
                            tparams["ln_pre_g"], tparams["ln_pre_b"]).astype(jnp.float32)
    # Per-head 0/1 segment matrices (hoisted out of the kernel body entirely).
    seg = (np.arange(W)[:, None] // C == np.arange(H)[None, :]).astype(np.float32)
    prep["segWH"] = jnp.asarray(seg, dtype=jnp.bfloat16)          # (W, H)
    prep["segHW"] = jnp.asarray(seg.T, dtype=jnp.bfloat16)        # (H, W)
    # Concatenate all task projections -> single matmul, split after the call.
    proj_list = tparams["projs"]
    prep["proj"] = jnp.concatenate(proj_list, axis=1).astype(jnp.float32)
    splits, off = [], 0
    for pm in proj_list:
        splits.append((off, off + pm.shape[1]))
        off += pm.shape[1]
    prep["proj_splits"] = splits
    return prep


def prepare_kv_mask(kvs, m_bool, N, T, P, W):
    L = T * P
    k_all = jnp.stack([kv["k"].reshape(N, L, W) for kv in kvs]).astype(jnp.bfloat16)
    v_all = jnp.stack([kv["v"].reshape(N, L, W) for kv in kvs]).astype(jnp.bfloat16)
    # m.repeat_interleave(patches, dim=-1)
    maskf = jnp.repeat(m_bool, P, axis=-1).astype(jnp.float32).reshape(N, L, 1)
    return k_all, v_all, maskf


# ----------------------------------------------------------------------------
# Pure-JAX reference (mirrors the PyTorch module exactly, all f32)
# ----------------------------------------------------------------------------
def _ref_block(x, k, v, m, p, H, C, W):
    N = x.shape[0]

    def mha(q):
        qp = q @ p["w_in"].T + p["b_in"]          # (N,1,2W)
        qp = qp.reshape(N, 1, H, 2 * C)
        q1, q2 = qp[..., :C], qp[..., C:]
        mm = m[:, None, :, None]                  # (N,1,L,1)
        scale = C ** 0.5
        aff1 = jnp.einsum("nqhc,nkhc->nqkh", q1 / scale, k)
        aff1 = jnp.where(mm, aff1, -jnp.inf)
        aff1 = jax.nn.softmax(aff1, axis=-2)
        aff2 = jnp.tanh(jnp.einsum("nqhc,nkhc->nqkh", q2 / scale, k))
        gate = -jnp.sum(jnp.abs(q2 - k), axis=-1)[:, None] / scale
        gate = 2.0 * jnp.where(mm, jax.nn.sigmoid(gate), 0.0)
        aff = (aff1 + aff2 * gate) / 2.0
        mix = jnp.einsum("nqlh,nlhc->nqhc", aff, v)
        return mix.reshape(N, 1, W) @ p["w_out"].T + p["b_out"]

    x = x + mha(_layernorm(x, p["ln1_g"], p["ln1_b"]))
    xn = _layernorm(x, p["ln2_g"], p["ln2_b"])
    h = xn @ p["w_fc"].T + p["b_fc"]
    h = h * jax.nn.sigmoid(1.702 * h)
    return x + h @ p["w_proj"].T + p["b_proj"]


def decoder_forward_reference(tparams, kvs, m_bool, N, T, P, H, C, W):
    L = T * P
    m = jnp.repeat(m_bool, P, axis=-1)                                  # (N, L)
    kvsf = [{kk: vv.reshape(N, L, H, C) for kk, vv in kv.items()} for kv in kvs]
    x = jnp.broadcast_to(tparams["cls"].reshape(1, 1, W), (N, 1, W))
    x = _layernorm(x, tparams["ln_pre_g"], tparams["ln_pre_b"])
    results = []
    for bp, kv in zip(tparams["blocks"], kvsf):
        x = _ref_block(x, kv["k"], kv["v"], m, bp, H, C, W)
        results.append(x)
    xcat = jnp.concatenate(results, axis=1)
    x_last = xcat[:, -1]
    vf = _layernorm(x_last, tparams["ln_post_g"], tparams["ln_post_b"])
    logits = [vf @ pm for pm in tparams["projs"]]
    return logits, vf


# ----------------------------------------------------------------------------
if __name__ == "__main__":
    N, T, P, H, C = 2, 4, 8, 4, 16          # batch, frames, patches, heads, head_dim
    W = H * C                               # width = 64
    n_blocks = 2                            # len(layer_indices)
    out_dims = [8]                          # config.out_dim

    key = jax.random.PRNGKey(0)
    kparam, kdata = jax.random.split(key)
    tparams = init_torch_style_params(kparam, W, H, C, n_blocks, out_dims)

    q16 = lambda a: a.astype(jnp.bfloat16).astype(jnp.float32)
    dkeys = iter(jax.random.split(kdata, 2 * n_blocks))
    kvs = [{"k": q16(0.5 * jax.random.normal(next(dkeys), (N, T, P, H, C))),
            "v": q16(0.5 * jax.random.normal(next(dkeys), (N, T, P, H, C)))}
           for _ in range(n_blocks)]
    # frame validity mask: batch 0 full, batch 1 with last frame padded
    m_bool = jnp.array([[True, True, True, True],
                        [True, True, True, False]])

    # one-time prep (hoisted off the forward path)
    prep = prepare_decoder_params(tparams, H, C)
    k_all, v_all, maskf = prepare_kv_mask(kvs, m_bool, N, T, P, W)

    logits_k, vf_k = decoder_forward_pallas(prep, k_all, v_all, maskf, H, C)
    jax.block_until_ready(vf_k)
    for lg in logits_k:
        jax.block_until_ready(lg)

    logits_r, vf_r = decoder_forward_reference(tparams, kvs, m_bool, N, T, P, H, C, W)
    # Tolerance reflects true bf16 MXU feeds (activations + weights + k/v rounded
    # to bf16, f32 accumulation) versus the all-f32 reference.
    np.testing.assert_allclose(np.asarray(vf_k), np.asarray(vf_r), rtol=5e-3, atol=5e-3)
    for a, b in zip(logits_k, logits_r):
        np.testing.assert_allclose(np.asarray(a), np.asarray(b), rtol=5e-3, atol=5e-3)

    print("KERNEL_OK")
</pallas_src>

<mosaic_0001>
module attributes {stable_mosaic.version = 11 : i64} {
  func.func @_decoder_kernel(%arg0: i32, %arg1: memref<1x64xf32, #tpu.memory_space<vmem>>, %arg2: memref<1x32x1xf32, #tpu.memory_space<vmem>>, %arg3: memref<64x4xbf16, #tpu.memory_space<vmem>>, %arg4: memref<4x64xbf16, #tpu.memory_space<vmem>>, %arg5: memref<2x1x32x64xbf16, #tpu.memory_space<vmem>>, %arg6: memref<2x1x32x64xbf16, #tpu.memory_space<vmem>>, %arg7: memref<2x64x128xbf16, #tpu.memory_space<vmem>>, %arg8: memref<2x64x64xbf16, #tpu.memory_space<vmem>>, %arg9: memref<2x64x256xbf16, #tpu.memory_space<vmem>>, %arg10: memref<2x256x64xbf16, #tpu.memory_space<vmem>>, %arg11: memref<2x1x768xf32, #tpu.memory_space<vmem>>, %arg12: memref<1x128xf32, #tpu.memory_space<vmem>>, %arg13: memref<64x8xf32, #tpu.memory_space<vmem>>, %arg14: memref<1x1x64xf32, #tpu.memory_space<vmem>>, %arg15: memref<1x1x8xf32, #tpu.memory_space<vmem>>) attributes {dimension_semantics = [#tpu.dimension_semantics<parallel>], iteration_bounds = array<i64: 2>, scalar_prefetch = 0 : i64, scratch_operands = 0 : i64, tpu.core_type = #tpu.core_type<tc>, window_params = [{pipeline_mode = #tpu.pipeline_mode<synchronous>, transform_indices = @transform_0, window_bounds = array<i64: 1, 64>}, {transform_indices = @transform_1, window_bounds = array<i64: 1, 32, 1>}, {pipeline_mode = #tpu.pipeline_mode<synchronous>, transform_indices = @transform_2, window_bounds = array<i64: 64, 4>}, {pipeline_mode = #tpu.pipeline_mode<synchronous>, transform_indices = @transform_3, window_bounds = array<i64: 4, 64>}, {transform_indices = @transform_4, window_bounds = array<i64: 2, 1, 32, 64>}, {transform_indices = @transform_5, window_bounds = array<i64: 2, 1, 32, 64>}, {pipeline_mode = #tpu.pipeline_mode<synchronous>, transform_indices = @transform_6, window_bounds = array<i64: 2, 64, 128>}, {pipeline_mode = #tpu.pipeline_mode<synchronous>, transform_indices = @transform_7, window_bounds = array<i64: 2, 64, 64>}, {pipeline_mode = #tpu.pipeline_mode<synchronous>, transform_indices = @transform_8, window_bounds = array<i64: 2, 64, 256>}, {pipeline_mode = #tpu.pipeline_mode<synchronous>, transform_indices = @transform_9, window_bounds = array<i64: 2, 256, 64>}, {pipeline_mode = #tpu.pipeline_mode<synchronous>, transform_indices = @transform_10, window_bounds = array<i64: 2, 1, 768>}, {pipeline_mode = #tpu.pipeline_mode<synchronous>, transform_indices = @transform_11, window_bounds = array<i64: 1, 128>}, {pipeline_mode = #tpu.pipeline_mode<synchronous>, transform_indices = @transform_12, window_bounds = array<i64: 64, 8>}, {transform_indices = @transform_13, window_bounds = array<i64: 1, 1, 64>}, {transform_indices = @transform_14, window_bounds = array<i64: 1, 1, 8>}]} {
    %c0 = arith.constant 0 : index
    %c0_0 = arith.constant 0 : index
    %0 = vector.load %arg1[%c0, %c0_0] : memref<1x64xf32, #tpu.memory_space<vmem>>, vector<1x64xf32>
    %c0_1 = arith.constant 0 : index
    %c0_2 = arith.constant 0 : index
    %c0_3 = arith.constant 0 : index
    %1 = vector.load %arg2[%c0_1, %c0_2, %c0_3] : memref<1x32x1xf32, #tpu.memory_space<vmem>>, vector<1x32x1xf32>
    %2 = vector.shape_cast %1 : vector<1x32x1xf32> to vector<32x1xf32>
    %cst = arith.constant 5.000000e-01 : f32
    %3 = vector.broadcast %cst : f32 to vector<32x1xf32>
    %4 = arith.cmpf ogt, %2, %3 : vector<32x1xf32>
    %c0_4 = arith.constant 0 : index
    %c0_5 = arith.constant 0 : index
    %5 = vector.load %arg3[%c0_4, %c0_5] : memref<64x4xbf16, #tpu.memory_space<vmem>>, vector<64x4xbf16>
    %c0_6 = arith.constant 0 : index
    %c0_7 = arith.constant 0 : index
    %6 = vector.load %arg4[%c0_6, %c0_7] : memref<4x64xbf16, #tpu.memory_space<vmem>>, vector<4x64xbf16>
    %c0_8 = arith.constant 0 : index
    %c0_9 = arith.constant 0 : index
    %c0_10 = arith.constant 0 : index
    %7 = vector.load %arg11[%c0_8, %c0_9, %c0_10] : memref<2x1x768xf32, #tpu.memory_space<vmem>>, vector<1x1x768xf32>
    %8 = vector.shape_cast %7 : vector<1x1x768xf32> to vector<1x768xf32>
    %9 = vector.extract_strided_slice %8 {offsets = [0, 0], sizes = [1, 64], strides = [1, 1]} : vector<1x768xf32> to vector<1x64xf32>
    %10 = vector.extract_strided_slice %8 {offsets = [0, 64], sizes = [1, 64], strides = [1, 1]} : vector<1x768xf32> to vector<1x64xf32>
    %11 = vector.extract_strided_slice %8 {offsets = [0, 128], sizes = [1, 128], strides = [1, 1]} : vector<1x768xf32> to vector<1x128xf32>
    %12 = vector.extract_strided_slice %8 {offsets = [0, 256], sizes = [1, 64], strides = [1, 1]} : vector<1x768xf32> to vector<1x64xf32>
    %13 = vector.extract_strided_slice %8 {offsets = [0, 320], sizes = [1, 64], strides = [1, 1]} : vector<1x768xf32> to vector<1x64xf32>
    %14 = vector.extract_strided_slice %8 {offsets = [0, 384], sizes = [1, 64], strides = [1, 1]} : vector<1x768xf32> to vector<1x64xf32>
    %15 = vector.extract_strided_slice %8 {offsets = [0, 448], sizes = [1, 256], strides = [1, 1]} : vector<1x768xf32> to vector<1x256xf32>
    %16 = vector.extract_strided_slice %8 {offsets = [0, 704], sizes = [1, 64], strides = [1, 1]} : vector<1x768xf32> to vector<1x64xf32>
    %c0_11 = arith.constant 0 : index
    %c0_12 = arith.constant 0 : index
    %c0_13 = arith.constant 0 : index
    %c0_14 = arith.constant 0 : index
    %17 = vector.load %arg5[%c0_11, %c0_12, %c0_13, %c0_14] : memref<2x1x32x64xbf16, #tpu.memory_space<vmem>>, vector<1x1x32x64xbf16>
    %18 = vector.shape_cast %17 : vector<1x1x32x64xbf16> to vector<32x64xbf16>
    %c0_15 = arith.constant 0 : index
    %c0_16 = arith.constant 0 : index
    %c0_17 = arith.constant 0 : index
    %c0_18 = arith.constant 0 : index
    %19 = vector.load %arg6[%c0_15, %c0_16, %c0_17, %c0_18] : memref<2x1x32x64xbf16, #tpu.memory_space<vmem>>, vector<1x1x32x64xbf16>
    %20 = vector.shape_cast %19 : vector<1x1x32x64xbf16> to vector<32x64xbf16>
    %cst_19 = arith.constant dense<0.000000e+00> : vector<1xf32>
    %21 = vector.multi_reduction <add>, %0, %cst_19 [1] : vector<1x64xf32> to vector<1xf32>
    %22 = vector.shape_cast %21 : vector<1xf32> to vector<1x1xf32>
    %cst_20 = arith.constant 6.400000e+01 : f32
    %23 = vector.broadcast %cst_20 : f32 to vector<1x1xf32>
    %24 = arith.divf %22, %23 : vector<1x1xf32>
    %25 = vector.broadcast %24 : vector<1x1xf32> to vector<1x64xf32>
    %26 = arith.subf %0, %25 : vector<1x64xf32>
    %27 = arith.mulf %26, %26 : vector<1x64xf32>
    %cst_21 = arith.constant dense<0.000000e+00> : vector<1xf32>
    %28 = vector.multi_reduction <add>, %27, %cst_21 [1] : vector<1x64xf32> to vector<1xf32>
    %29 = vector.shape_cast %28 : vector<1xf32> to vector<1x1xf32>
    %cst_22 = arith.constant 6.400000e+01 : f32
    %30 = vector.broadcast %cst_22 : f32 to vector<1x1xf32>
    %31 = arith.divf %29, %30 : vector<1x1xf32>
    %32 = vector.broadcast %24 : vector<1x1xf32> to vector<1x64xf32>
    %33 = arith.subf %0, %32 : vector<1x64xf32>
    %cst_23 = arith.constant 9.99999974E-6 : f32
    %34 = vector.broadcast %cst_23 : f32 to vector<1x1xf32>
    %35 = arith.addf %31, %34 : vector<1x1xf32>
    %36 = math.rsqrt %35 : vector<1x1xf32>
    %37 = vector.broadcast %36 : vector<1x1xf32> to vector<1x64xf32>
    %38 = arith.mulf %33, %37 : vector<1x64xf32>
    %39 = arith.mulf %38, %9 : vector<1x64xf32>
    %40 = arith.addf %39, %10 : vector<1x64xf32>
    %41 = arith.truncf %40 : vector<1x64xf32> to vector<1x64xbf16>
    %c0_24 = arith.constant 0 : index
    %c0_25 = arith.constant 0 : index
    %c0_26 = arith.constant 0 : index
    %42 = vector.load %arg7[%c0_24, %c0_25, %c0_26] : memref<2x64x128xbf16, #tpu.memory_space<vmem>>, vector<1x64x128xbf16>
    %43 = vector.shape_cast %42 : vector<1x64x128xbf16> to vector<64x128xbf16>
    %cst_27 = arith.constant dense<0.000000e+00> : vector<1x128xf32>
    %44 = tpu.matmul %41, %43, %cst_27 {dimension_numbers = #tpu.dot_dimension_numbers<[1], [0], [0], [1], [0, 0, 1, 1], [], []>} : vector<1x64xbf16>, vector<64x128xbf16>, vector<1x128xf32> -> vector<1x128xf32>
    %45 = arith.addf %44, %11 : vector<1x128xf32>
    %46 = vector.extract_strided_slice %45 {offsets = [0, 0], sizes = [1, 64], strides = [1, 1]} : vector<1x128xf32> to vector<1x64xf32>
    %47 = vector.extract_strided_slice %45 {offsets = [0, 64], sizes = [1, 64], strides = [1, 1]} : vector<1x128xf32> to vector<1x64xf32>
    %48 = arith.extf %18 : vector<32x64xbf16> to vector<32x64xf32>
    %49 = vector.broadcast %46 : vector<1x64xf32> to vector<32x64xf32>
    %50 = arith.mulf %48, %49 : vector<32x64xf32>
    %51 = arith.extf %18 : vector<32x64xbf16> to vector<32x64xf32>
    %52 = vector.broadcast %47 : vector<1x64xf32> to vector<32x64xf32>
    %53 = arith.mulf %51, %52 : vector<32x64xf32>
    %54 = arith.extf %18 : vector<32x64xbf16> to vector<32x64xf32>
    %55 = vector.broadcast %47 : vector<1x64xf32> to vector<32x64xf32>
    %56 = arith.subf %55, %54 : vector<32x64xf32>
    %57 = math.absf %56 : vector<32x64xf32>
    %58 = tpu.concatenate %50, %53, %57 in 0 : vector<32x64xf32>, vector<32x64xf32>, vector<32x64xf32> -> vector<96x64xf32>
    %59 = arith.truncf %58 : vector<96x64xf32> to vector<96x64xbf16>
    %cst_28 = arith.constant dense<0.000000e+00> : vector<96x4xf32>
    %60 = tpu.matmul %59, %5, %cst_28 {dimension_numbers = #tpu.dot_dimension_numbers<[1], [0], [0], [1], [0, 0, 1, 1], [], []>} : vector<96x64xbf16>, vector<64x4xbf16>, vector<96x4xf32> -> vector<96x4xf32>
    %cst_29 = arith.constant 2.500000e-01 : f32
    %61 = vector.broadcast %cst_29 : f32 to vector<96x4xf32>
    %62 = arith.mulf %60, %61 : vector<96x4xf32>
    %63 = vector.extract_strided_slice %62 {offsets = [0, 0], sizes = [32, 4], strides = [1, 1]} : vector<96x4xf32> to vector<32x4xf32>
    %64 = vector.extract_strided_slice %62 {offsets = [32, 0], sizes = [32, 4], strides = [1, 1]} : vector<96x4xf32> to vector<32x4xf32>
    %65 = vector.extract_strided_slice %62 {offsets = [64, 0], sizes = [32, 4], strides = [1, 1]} : vector<96x4xf32> to vector<32x4xf32>
    %cst_30 = arith.constant 0xFF800000 : f32
    %66 = vector.shape_cast %4 : vector<32x1xi1> to vector<32x1xi1>
    %67 = vector.broadcast %66 : vector<32x1xi1> to vector<32x4xi1>
    %68 = vector.broadcast %cst_30 : f32 to vector<32x4xf32>
    %69 = arith.select %67, %63, %68 : vector<32x4xi1>, vector<32x4xf32>
    %cst_31 = arith.constant dense<0xFF800000> : vector<4xf32>
    %70 = vector.multi_reduction <maximumf>, %69, %cst_31 [0] : vector<32x4xf32> to vector<4xf32>
    %71 = vector.shape_cast %70 : vector<4xf32> to vector<1x4xf32>
    %72 = vector.broadcast %71 : vector<1x4xf32> to vector<32x4xf32>
    %73 = arith.subf %69, %72 : vector<32x4xf32>
    %74 = math.exp %73 : vector<32x4xf32>
    %cst_32 = arith.constant dense<0.000000e+00> : vector<4xf32>
    %75 = vector.multi_reduction <add>, %74, %cst_32 [0] : vector<32x4xf32> to vector<4xf32>
    %76 = vector.shape_cast %75 : vector<4xf32> to vector<1x4xf32>
    %77 = vector.broadcast %76 : vector<1x4xf32> to vector<32x4xf32>
    %78 = arith.divf %74, %77 : vector<32x4xf32>
    %79 = math.tanh %64 : vector<32x4xf32>
    %cst_33 = arith.constant 0.000000e+00 : f32
    %80 = vector.broadcast %cst_33 : f32 to vector<32x4xf32>
    %81 = arith.subf %80, %65 : vector<32x4xf32>
    %82 = arith.negf %81 : vector<32x4xf32>
    %83 = math.exp %82 : vector<32x4xf32>
    %cst_34 = arith.constant 1.000000e+00 : f32
    %84 = vector.broadcast %cst_34 : f32 to vector<32x4xf32>
    %85 = arith.addf %84, %83 : vector<32x4xf32>
    %86 = arith.divf %84, %85 : vector<32x4xf32>
    %cst_35 = arith.constant 2.000000e+00 : f32
    %87 = vector.broadcast %cst_35 : f32 to vector<32x4xf32>
    %88 = arith.mulf %87, %86 : vector<32x4xf32>
    %89 = arith.mulf %79, %88 : vector<32x4xf32>
    %90 = vector.broadcast %2 : vector<32x1xf32> to vector<32x4xf32>
    %91 = arith.mulf %89, %90 : vector<32x4xf32>
    %92 = arith.addf %78, %91 : vector<32x4xf32>
    %cst_36 = arith.constant 5.000000e-01 : f32
    %93 = vector.broadcast %cst_36 : f32 to vector<32x4xf32>
    %94 = arith.mulf %93, %92 : vector<32x4xf32>
    %95 = arith.truncf %94 : vector<32x4xf32> to vector<32x4xbf16>
    %cst_37 = arith.constant dense<0.000000e+00> : vector<32x64xf32>
    %96 = tpu.matmul %95, %6, %cst_37 {dimension_numbers = #tpu.dot_dimension_numbers<[1], [0], [0], [1], [0, 0, 1, 1], [], []>} : vector<32x4xbf16>, vector<4x64xbf16>, vector<32x64xf32> -> vector<32x64xf32>
    %97 = arith.extf %20 : vector<32x64xbf16> to vector<32x64xf32>
    %98 = arith.mulf %96, %97 : vector<32x64xf32>
    %cst_38 = arith.constant dense<0.000000e+00> : vector<64xf32>
    %99 = vector.multi_reduction <add>, %98, %cst_38 [0] : vector<32x64xf32> to vector<64xf32>
    %100 = vector.shape_cast %99 : vector<64xf32> to vector<1x64xf32>
    %101 = arith.truncf %100 : vector<1x64xf32> to vector<1x64xbf16>
    %c0_39 = arith.constant 0 : index
    %c0_40 = arith.constant 0 : index
    %c0_41 = arith.constant 0 : index
    %102 = vector.load %arg8[%c0_39, %c0_40, %c0_41] : memref<2x64x64xbf16, #tpu.memory_space<vmem>>, vector<1x64x64xbf16>
    %103 = vector.shape_cast %102 : vector<1x64x64xbf16> to vector<64x64xbf16>
    %cst_42 = arith.constant dense<0.000000e+00> : vector<1x64xf32>
    %104 = tpu.matmul %101, %103, %cst_42 {dimension_numbers = #tpu.dot_dimension_numbers<[1], [0], [0], [1], [0, 0, 1, 1], [], []>} : vector<1x64xbf16>, vector<64x64xbf16>, vector<1x64xf32> -> vector<1x64xf32>
    %105 = arith.addf %0, %104 : vector<1x64xf32>
    %106 = arith.addf %105, %12 : vector<1x64xf32>
    %cst_43 = arith.constant dense<0.000000e+00> : vector<1xf32>
    %107 = vector.multi_reduction <add>, %106, %cst_43 [1] : vector<1x64xf32> to vector<1xf32>
    %108 = vector.shape_cast %107 : vector<1xf32> to vector<1x1xf32>
    %cst_44 = arith.constant 6.400000e+01 : f32
    %109 = vector.broadcast %cst_44 : f32 to vector<1x1xf32>
    %110 = arith.divf %108, %109 : vector<1x1xf32>
    %111 = vector.broadcast %110 : vector<1x1xf32> to vector<1x64xf32>
    %112 = arith.subf %106, %111 : vector<1x64xf32>
    %113 = arith.mulf %112, %112 : vector<1x64xf32>
    %cst_45 = arith.constant dense<0.000000e+00> : vector<1xf32>
    %114 = vector.multi_reduction <add>, %113, %cst_45 [1] : vector<1x64xf32> to vector<1xf32>
    %115 = vector.shape_cast %114 : vector<1xf32> to vector<1x1xf32>
    %cst_46 = arith.constant 6.400000e+01 : f32
    %116 = vector.broadcast %cst_46 : f32 to vector<1x1xf32>
    %117 = arith.divf %115, %116 : vector<1x1xf32>
    %118 = vector.broadcast %110 : vector<1x1xf32> to vector<1x64xf32>
    %119 = arith.subf %106, %118 : vector<1x64xf32>
    %cst_47 = arith.constant 9.99999974E-6 : f32
    %120 = vector.broadcast %cst_47 : f32 to vector<1x1xf32>
    %121 = arith.addf %117, %120 : vector<1x1xf32>
    %122 = math.rsqrt %121 : vector<1x1xf32>
    %123 = vector.broadcast %122 : vector<1x1xf32> to vector<1x64xf32>
    %124 = arith.mulf %119, %123 : vector<1x64xf32>
    %125 = arith.mulf %124, %13 : vector<1x64xf32>
    %126 = arith.addf %125, %14 : vector<1x64xf32>
    %127 = arith.truncf %126 : vector<1x64xf32> to vector<1x64xbf16>
    %c0_48 = arith.constant 0 : index
    %c0_49 = arith.constant 0 : index
    %c0_50 = arith.constant 0 : index
    %128 = vector.load %arg9[%c0_48, %c0_49, %c0_50] : memref<2x64x256xbf16, #tpu.memory_space<vmem>>, vector<1x64x256xbf16>
    %129 = vector.shape_cast %128 : vector<1x64x256xbf16> to vector<64x256xbf16>
    %cst_51 = arith.constant dense<0.000000e+00> : vector<1x256xf32>
    %130 = tpu.matmul %127, %129, %cst_51 {dimension_numbers = #tpu.dot_dimension_numbers<[1], [0], [0], [1], [0, 0, 1, 1], [], []>} : vector<1x64xbf16>, vector<64x256xbf16>, vector<1x256xf32> -> vector<1x256xf32>
    %131 = arith.addf %130, %15 : vector<1x256xf32>
    %cst_52 = arith.constant 1.702000e+00 : f32
    %132 = vector.broadcast %cst_52 : f32 to vector<1x256xf32>
    %133 = arith.mulf %132, %131 : vector<1x256xf32>
    %134 = arith.negf %133 : vector<1x256xf32>
    %135 = math.exp %134 : vector<1x256xf32>
    %cst_53 = arith.constant 1.000000e+00 : f32
    %136 = vector.broadcast %cst_53 : f32 to vector<1x256xf32>
    %137 = arith.addf %136, %135 : vector<1x256xf32>
    %138 = arith.divf %136, %137 : vector<1x256xf32>
    %139 = arith.mulf %131, %138 : vector<1x256xf32>
    %140 = arith.truncf %139 : vector<1x256xf32> to vector<1x256xbf16>
    %c0_54 = arith.constant 0 : index
    %c0_55 = arith.constant 0 : index
    %c0_56 = arith.constant 0 : index
    %141 = vector.load %arg10[%c0_54, %c0_55, %c0_56] : memref<2x256x64xbf16, #tpu.memory_space<vmem>>, vector<1x256x64xbf16>
    %142 = vector.shape_cast %141 : vector<1x256x64xbf16> to vector<256x64xbf16>
    %cst_57 = arith.constant dense<0.000000e+00> : vector<1x64xf32>
    %143 = tpu.matmul %140, %142, %cst_57 {dimension_numbers = #tpu.dot_dimension_numbers<[1], [0], [0], [1], [0, 0, 1, 1], [], []>} : vector<1x256xbf16>, vector<256x64xbf16>, vector<1x64xf32> -> vector<1x64xf32>
    %144 = arith.addf %106, %143 : vector<1x64xf32>
    %145 = arith.addf %144, %16 : vector<1x64xf32>
    %c1 = arith.constant 1 : index
    %c0_58 = arith.constant 0 : index
    %c0_59 = arith.constant 0 : index
    %146 = vector.load %arg11[%c1, %c0_58, %c0_59] : memref<2x1x768xf32, #tpu.memory_space<vmem>>, vector<1x1x768xf32>
    %147 = vector.shape_cast %146 : vector<1x1x768xf32> to vector<1x768xf32>
    %148 = vector.extract_strided_slice %147 {offsets = [0, 0], sizes = [1, 64], strides = [1, 1]} : vector<1x768xf32> to vector<1x64xf32>
    %149 = vector.extract_strided_slice %147 {offsets = [0, 64], sizes = [1, 64], strides = [1, 1]} : vector<1x768xf32> to vector<1x64xf32>
    %150 = vector.extract_strided_slice %147 {offsets = [0, 128], sizes = [1, 128], strides = [1, 1]} : vector<1x768xf32> to vector<1x128xf32>
    %151 = vector.extract_strided_slice %147 {offsets = [0, 256], sizes = [1, 64], strides = [1, 1]} : vector<1x768xf32> to vector<1x64xf32>
    %152 = vector.extract_strided_slice %147 {offsets = [0, 320], sizes = [1, 64], strides = [1, 1]} : vector<1x768xf32> to vector<1x64xf32>
    %153 = vector.extract_strided_slice %147 {offsets = [0, 384], sizes = [1, 64], strides = [1, 1]} : vector<1x768xf32> to vector<1x64xf32>
    %154 = vector.extract_strided_slice %147 {offsets = [0, 448], sizes = [1, 256], strides = [1, 1]} : vector<1x768xf32> to vector<1x256xf32>
    %155 = vector.extract_strided_slice %147 {offsets = [0, 704], sizes = [1, 64], strides = [1, 1]} : vector<1x768xf32> to vector<1x64xf32>
    %c1_60 = arith.constant 1 : index
    %c0_61 = arith.constant 0 : index
    %c0_62 = arith.constant 0 : index
    %c0_63 = arith.constant 0 : index
    %156 = vector.load %arg5[%c1_60, %c0_61, %c0_62, %c0_63] : memref<2x1x32x64xbf16, #tpu.memory_space<vmem>>, vector<1x1x32x64xbf16>
    %157 = vector.shape_cast %156 : vector<1x1x32x64xbf16> to vector<32x64xbf16>
    %c1_64 = arith.constant 1 : index
    %c0_65 = arith.constant 0 : index
    %c0_66 = arith.constant 0 : index
    %c0_67 = arith.constant 0 : index
    %158 = vector.load %arg6[%c1_64, %c0_65, %c0_66, %c0_67] : memref<2x1x32x64xbf16, #tpu.memory_space<vmem>>, vector<1x1x32x64xbf16>
    %159 = vector.shape_cast %158 : vector<1x1x32x64xbf16> to vector<32x64xbf16>
    %cst_68 = arith.constant dense<0.000000e+00> : vector<1xf32>
    %160 = vector.multi_reduction <add>, %145, %cst_68 [1] : vector<1x64xf32> to vector<1xf32>
    %161 = vector.shape_cast %160 : vector<1xf32> to vector<1x1xf32>
    %cst_69 = arith.constant 6.400000e+01 : f32
    %162 = vector.broadcast %cst_69 : f32 to vector<1x1xf32>
    %163 = arith.divf %161, %162 : vector<1x1xf32>
    %164 = vector.broadcast %163 : vector<1x1xf32> to vector<1x64xf32>
    %165 = arith.subf %145, %164 : vector<1x64xf32>
    %166 = arith.mulf %165, %165 : vector<1x64xf32>
    %cst_70 = arith.constant dense<0.000000e+00> : vector<1xf32>
    %167 = vector.multi_reduction <add>, %166, %cst_70 [1] : vector<1x64xf32> to vector<1xf32>
    %168 = vector.shape_cast %167 : vector<1xf32> to vector<1x1xf32>
    %cst_71 = arith.constant 6.400000e+01 : f32
    %169 = vector.broadcast %cst_71 : f32 to vector<1x1xf32>
    %170 = arith.divf %168, %169 : vector<1x1xf32>
    %171 = vector.broadcast %163 : vector<1x1xf32> to vector<1x64xf32>
    %172 = arith.subf %145, %171 : vector<1x64xf32>
    %cst_72 = arith.constant 9.99999974E-6 : f32
    %173 = vector.broadcast %cst_72 : f32 to vector<1x1xf32>
    %174 = arith.addf %170, %173 : vector<1x1xf32>
    %175 = math.rsqrt %174 : vector<1x1xf32>
    %176 = vector.broadcast %175 : vector<1x1xf32> to vector<1x64xf32>
    %177 = arith.mulf %172, %176 : vector<1x64xf32>
    %178 = arith.mulf %177, %148 : vector<1x64xf32>
    %179 = arith.addf %178, %149 : vector<1x64xf32>
    %180 = arith.truncf %179 : vector<1x64xf32> to vector<1x64xbf16>
    %c1_73 = arith.constant 1 : index
    %c0_74 = arith.constant 0 : index
    %c0_75 = arith.constant 0 : index
    %181 = vector.load %arg7[%c1_73, %c0_74, %c0_75] : memref<2x64x128xbf16, #tpu.memory_space<vmem>>, vector<1x64x128xbf16>
    %182 = vector.shape_cast %181 : vector<1x64x128xbf16> to vector<64x128xbf16>
    %cst_76 = arith.constant dense<0.000000e+00> : vector<1x128xf32>
    %183 = tpu.matmul %180, %182, %cst_76 {dimension_numbers = #tpu.dot_dimension_numbers<[1], [0], [0], [1], [0, 0, 1, 1], [], []>} : vector<1x64xbf16>, vector<64x128xbf16>, vector<1x128xf32> -> vector<1x128xf32>
    %184 = arith.addf %183, %150 : vector<1x128xf32>
    %185 = vector.extract_strided_slice %184 {offsets = [0, 0], sizes = [1, 64], strides = [1, 1]} : vector<1x128xf32> to vector<1x64xf32>
    %186 = vector.extract_strided_slice %184 {offsets = [0, 64], sizes = [1, 64], strides = [1, 1]} : vector<1x128xf32> to vector<1x64xf32>
    %187 = arith.extf %157 : vector<32x64xbf16> to vector<32x64xf32>
    %188 = vector.broadcast %185 : vector<1x64xf32> to vector<32x64xf32>
    %189 = arith.mulf %187, %188 : vector<32x64xf32>
    %190 = arith.extf %157 : vector<32x64xbf16> to vector<32x64xf32>
    %191 = vector.broadcast %186 : vector<1x64xf32> to vector<32x64xf32>
    %192 = arith.mulf %190, %191 : vector<32x64xf32>
    %193 = arith.extf %157 : vector<32x64xbf16> to vector<32x64xf32>
    %194 = vector.broadcast %186 : vector<1x64xf32> to vector<32x64xf32>
    %195 = arith.subf %194, %193 : vector<32x64xf32>
    %196 = math.absf %195 : vector<32x64xf32>
    %197 = tpu.concatenate %189, %192, %196 in 0 : vector<32x64xf32>, vector<32x64xf32>, vector<32x64xf32> -> vector<96x64xf32>
    %198 = arith.truncf %197 : vector<96x64xf32> to vector<96x64xbf16>
    %cst_77 = arith.constant dense<0.000000e+00> : vector<96x4xf32>
    %199 = tpu.matmul %198, %5, %cst_77 {dimension_numbers = #tpu.dot_dimension_numbers<[1], [0], [0], [1], [0, 0, 1, 1], [], []>} : vector<96x64xbf16>, vector<64x4xbf16>, vector<96x4xf32> -> vector<96x4xf32>
    %cst_78 = arith.constant 2.500000e-01 : f32
    %200 = vector.broadcast %cst_78 : f32 to vector<96x4xf32>
    %201 = arith.mulf %199, %200 : vector<96x4xf32>
    %202 = vector.extract_strided_slice %201 {offsets = [0, 0], sizes = [32, 4], strides = [1, 1]} : vector<96x4xf32> to vector<32x4xf32>
    %203 = vector.extract_strided_slice %201 {offsets = [32, 0], sizes = [32, 4], strides = [1, 1]} : vector<96x4xf32> to vector<32x4xf32>
    %204 = vector.extract_strided_slice %201 {offsets = [64, 0], sizes = [32, 4], strides = [1, 1]} : vector<96x4xf32> to vector<32x4xf32>
    %cst_79 = arith.constant 0xFF800000 : f32
    %205 = vector.shape_cast %4 : vector<32x1xi1> to vector<32x1xi1>
    %206 = vector.broadcast %205 : vector<32x1xi1> to vector<32x4xi1>
    %207 = vector.broadcast %cst_79 : f32 to vector<32x4xf32>
    %208 = arith.select %206, %202, %207 : vector<32x4xi1>, vector<32x4xf32>
    %cst_80 = arith.constant dense<0xFF800000> : vector<4xf32>
    %209 = vector.multi_reduction <maximumf>, %208, %cst_80 [0] : vector<32x4xf32> to vector<4xf32>
    %210 = vector.shape_cast %209 : vector<4xf32> to vector<1x4xf32>
    %211 = vector.broadcast %210 : vector<1x4xf32> to vector<32x4xf32>
    %212 = arith.subf %208, %211 : vector<32x4xf32>
    %213 = math.exp %212 : vector<32x4xf32>
    %cst_81 = arith.constant dense<0.000000e+00> : vector<4xf32>
    %214 = vector.multi_reduction <add>, %213, %cst_81 [0] : vector<32x4xf32> to vector<4xf32>
    %215 = vector.shape_cast %214 : vector<4xf32> to vector<1x4xf32>
    %216 = vector.broadcast %215 : vector<1x4xf32> to vector<32x4xf32>
    %217 = arith.divf %213, %216 : vector<32x4xf32>
    %218 = math.tanh %203 : vector<32x4xf32>
    %cst_82 = arith.constant 0.000000e+00 : f32
    %219 = vector.broadcast %cst_82 : f32 to vector<32x4xf32>
    %220 = arith.subf %219, %204 : vector<32x4xf32>
    %221 = arith.negf %220 : vector<32x4xf32>
    %222 = math.exp %221 : vector<32x4xf32>
    %cst_83 = arith.constant 1.000000e+00 : f32
    %223 = vector.broadcast %cst_83 : f32 to vector<32x4xf32>
    %224 = arith.addf %223, %222 : vector<32x4xf32>
    %225 = arith.divf %223, %224 : vector<32x4xf32>
    %cst_84 = arith.constant 2.000000e+00 : f32
    %226 = vector.broadcast %cst_84 : f32 to vector<32x4xf32>
    %227 = arith.mulf %226, %225 : vector<32x4xf32>
    %228 = arith.mulf %218, %227 : vector<32x4xf32>
    %229 = vector.broadcast %2 : vector<32x1xf32> to vector<32x4xf32>
    %230 = arith.mulf %228, %229 : vector<32x4xf32>
    %231 = arith.addf %217, %230 : vector<32x4xf32>
    %cst_85 = arith.constant 5.000000e-01 : f32
    %232 = vector.broadcast %cst_85 : f32 to vector<32x4xf32>
    %233 = arith.mulf %232, %231 : vector<32x4xf32>
    %234 = arith.truncf %233 : vector<32x4xf32> to vector<32x4xbf16>
    %cst_86 = arith.constant dense<0.000000e+00> : vector<32x64xf32>
    %235 = tpu.matmul %234, %6, %cst_86 {dimension_numbers = #tpu.dot_dimension_numbers<[1], [0], [0], [1], [0, 0, 1, 1], [], []>} : vector<32x4xbf16>, vector<4x64xbf16>, vector<32x64xf32> -> vector<32x64xf32>
    %236 = arith.extf %159 : vector<32x64xbf16> to vector<32x64xf32>
    %237 = arith.mulf %235, %236 : vector<32x64xf32>
    %cst_87 = arith.constant dense<0.000000e+00> : vector<64xf32>
    %238 = vector.multi_reduction <add>, %237, %cst_87 [0] : vector<32x64xf32> to vector<64xf32>
    %239 = vector.shape_cast %238 : vector<64xf32> to vector<1x64xf32>
    %240 = arith.truncf %239 : vector<1x64xf32> to vector<1x64xbf16>
    %c1_88 = arith.constant 1 : index
    %c0_89 = arith.constant 0 : index
    %c0_90 = arith.constant 0 : index
    %241 = vector.load %arg8[%c1_88, %c0_89, %c0_90] : memref<2x64x64xbf16, #tpu.memory_space<vmem>>, vector<1x64x64xbf16>
    %242 = vector.shape_cast %241 : vector<1x64x64xbf16> to vector<64x64xbf16>
    %cst_91 = arith.constant dense<0.000000e+00> : vector<1x64xf32>
    %243 = tpu.matmul %240, %242, %cst_91 {dimension_numbers = #tpu.dot_dimension_numbers<[1], [0], [0], [1], [0, 0, 1, 1], [], []>} : vector<1x64xbf16>, vector<64x64xbf16>, vector<1x64xf32> -> vector<1x64xf32>
    %244 = arith.addf %145, %243 : vector<1x64xf32>
    %245 = arith.addf %244, %151 : vector<1x64xf32>
    %cst_92 = arith.constant dense<0.000000e+00> : vector<1xf32>
    %246 = vector.multi_reduction <add>, %245, %cst_92 [1] : vector<1x64xf32> to vector<1xf32>
    %247 = vector.shape_cast %246 : vector<1xf32> to vector<1x1xf32>
    %cst_93 = arith.constant 6.400000e+01 : f32
    %248 = vector.broadcast %cst_93 : f32 to vector<1x1xf32>
    %249 = arith.divf %247, %248 : vector<1x1xf32>
    %250 = vector.broadcast %249 : vector<1x1xf32> to vector<1x64xf32>
    %251 = arith.subf %245, %250 : vector<1x64xf32>
    %252 = arith.mulf %251, %251 : vector<1x64xf32>
    %cst_94 = arith.constant dense<0.000000e+00> : vector<1xf32>
    %253 = vector.multi_reduction <add>, %252, %cst_94 [1] : vector<1x64xf32> to vector<1xf32>
    %254 = vector.shape_cast %253 : vector<1xf32> to vector<1x1xf32>
    %cst_95 = arith.constant 6.400000e+01 : f32
    %255 = vector.broadcast %cst_95 : f32 to vector<1x1xf32>
    %256 = arith.divf %254, %255 : vector<1x1xf32>
    %257 = vector.broadcast %249 : vector<1x1xf32> to vector<1x64xf32>
    %258 = arith.subf %245, %257 : vector<1x64xf32>
    %cst_96 = arith.constant 9.99999974E-6 : f32
    %259 = vector.broadcast %cst_96 : f32 to vector<1x1xf32>
    %260 = arith.addf %256, %259 : vector<1x1xf32>
    %261 = math.rsqrt %260 : vector<1x1xf32>
    %262 = vector.broadcast %261 : vector<1x1xf32> to vector<1x64xf32>
    %263 = arith.mulf %258, %262 : vector<1x64xf32>
    %264 = arith.mulf %263, %152 : vector<1x64xf32>
    %265 = arith.addf %264, %153 : vector<1x64xf32>
    %266 = arith.truncf %265 : vector<1x64xf32> to vector<1x64xbf16>
    %c1_97 = arith.constant 1 : index
    %c0_98 = arith.constant 0 : index
    %c0_99 = arith.constant 0 : index
    %267 = vector.load %arg9[%c1_97, %c0_98, %c0_99] : memref<2x64x256xbf16, #tpu.memory_space<vmem>>, vector<1x64x256xbf16>
    %268 = vector.shape_cast %267 : vector<1x64x256xbf16> to vector<64x256xbf16>
    %cst_100 = arith.constant dense<0.000000e+00> : vector<1x256xf32>
    %269 = tpu.matmul %266, %268, %cst_100 {dimension_numbers = #tpu.dot_dimension_numbers<[1], [0], [0], [1], [0, 0, 1, 1], [], []>} : vector<1x64xbf16>, vector<64x256xbf16>, vector<1x256xf32> -> vector<1x256xf32>
    %270 = arith.addf %269, %154 : vector<1x256xf32>
    %cst_101 = arith.constant 1.702000e+00 : f32
    %271 = vector.broadcast %cst_101 : f32 to vector<1x256xf32>
    %272 = arith.mulf %271, %270 : vector<1x256xf32>
    %273 = arith.negf %272 : vector<1x256xf32>
    %274 = math.exp %273 : vector<1x256xf32>
    %cst_102 = arith.constant 1.000000e+00 : f32
    %275 = vector.broadcast %cst_102 : f32 to vector<1x256xf32>
    %276 = arith.addf %275, %274 : vector<1x256xf32>
    %277 = arith.divf %275, %276 : vector<1x256xf32>
    %278 = arith.mulf %270, %277 : vector<1x256xf32>
    %279 = arith.truncf %278 : vector<1x256xf32> to vector<1x256xbf16>
    %c1_103 = arith.constant 1 : index
    %c0_104 = arith.constant 0 : index
    %c0_105 = arith.constant 0 : index
    %280 = vector.load %arg10[%c1_103, %c0_104, %c0_105] : memref<2x256x64xbf16, #tpu.memory_space<vmem>>, vector<1x256x64xbf16>
    %281 = vector.shape_cast %280 : vector<1x256x64xbf16> to vector<256x64xbf16>
    %cst_106 = arith.constant dense<0.000000e+00> : vector<1x64xf32>
    %282 = tpu.matmul %279, %281, %cst_106 {dimension_numbers = #tpu.dot_dimension_numbers<[1], [0], [0], [1], [0, 0, 1, 1], [], []>} : vector<1x256xbf16>, vector<256x64xbf16>, vector<1x64xf32> -> vector<1x64xf32>
    %283 = arith.addf %245, %282 : vector<1x64xf32>
    %284 = arith.addf %283, %155 : vector<1x64xf32>
    %c0_107 = arith.constant 0 : index
    %c0_108 = arith.constant 0 : index
    %285 = vector.load %arg12[%c0_107, %c0_108] : memref<1x128xf32, #tpu.memory_space<vmem>>, vector<1x128xf32>
    %286 = vector.extract_strided_slice %285 {offsets = [0, 0], sizes = [1, 64], strides = [1, 1]} : vector<1x128xf32> to vector<1x64xf32>
    %287 = vector.extract_strided_slice %285 {offsets = [0, 64], sizes = [1, 64], strides = [1, 1]} : vector<1x128xf32> to vector<1x64xf32>
    %cst_109 = arith.constant dense<0.000000e+00> : vector<1xf32>
    %288 = vector.multi_reduction <add>, %284, %cst_109 [1] : vector<1x64xf32> to vector<1xf32>
    %289 = vector.shape_cast %288 : vector<1xf32> to vector<1x1xf32>
    %cst_110 = arith.constant 6.400000e+01 : f32
    %290 = vector.broadcast %cst_110 : f32 to vector<1x1xf32>
    %291 = arith.divf %289, %290 : vector<1x1xf32>
    %292 = vector.broadcast %291 : vector<1x1xf32> to vector<1x64xf32>
    %293 = arith.subf %284, %292 : vector<1x64xf32>
    %294 = arith.mulf %293, %293 : vector<1x64xf32>
    %cst_111 = arith.constant dense<0.000000e+00> : vector<1xf32>
    %295 = vector.multi_reduction <add>, %294, %cst_111 [1] : vector<1x64xf32> to vector<1xf32>
    %296 = vector.shape_cast %295 : vector<1xf32> to vector<1x1xf32>
    %cst_112 = arith.constant 6.400000e+01 : f32
    %297 = vector.broadcast %cst_112 : f32 to vector<1x1xf32>
    %298 = arith.divf %296, %297 : vector<1x1xf32>
    %299 = vector.broadcast %291 : vector<1x1xf32> to vector<1x64xf32>
    %300 = arith.subf %284, %299 : vector<1x64xf32>
    %cst_113 = arith.constant 9.99999974E-6 : f32
    %301 = vector.broadcast %cst_113 : f32 to vector<1x1xf32>
    %302 = arith.addf %298, %301 : vector<1x1xf32>
    %303 = math.rsqrt %302 : vector<1x1xf32>
    %304 = vector.broadcast %303 : vector<1x1xf32> to vector<1x64xf32>
    %305 = arith.mulf %300, %304 : vector<1x64xf32>
    %306 = arith.mulf %305, %286 : vector<1x64xf32>
    %307 = arith.addf %306, %287 : vector<1x64xf32>
    %308 = vector.shape_cast %307 : vector<1x64xf32> to vector<1x1x64xf32>
    %c0_114 = arith.constant 0 : index
    %c0_115 = arith.constant 0 : index
    %c0_116 = arith.constant 0 : index
    %309 = vector.load %arg14[%c0_114, %c0_115, %c0_116] : memref<1x1x64xf32, #tpu.memory_space<vmem>>, vector<1x1x64xf32>
    tpu.vector_store %arg14[%c0_114, %c0_115, %c0_116], %308 {strides = array<i32>} : memref<1x1x64xf32, #tpu.memory_space<vmem>>, vector<1x1x64xf32>,
    %c0_117 = arith.constant 0 : index
    %c0_118 = arith.constant 0 : index
    %310 = vector.load %arg13[%c0_117, %c0_118] : memref<64x8xf32, #tpu.memory_space<vmem>>, vector<64x8xf32>
    %cst_119 = arith.constant dense<0.000000e+00> : vector<1x8xf32>
    %311 = tpu.matmul %307, %310, %cst_119 {dimension_numbers = #tpu.dot_dimension_numbers<[1], [0], [0], [1], [0, 0, 1, 1], [], []>} : vector<1x64xf32>, vector<64x8xf32>, vector<1x8xf32> -> vector<1x8xf32>
    %312 = vector.shape_cast %311 : vector<1x8xf32> to vector<1x1x8xf32>
    %c0_120 = arith.constant 0 : index
    %c0_121 = arith.constant 0 : index
    %c0_122 = arith.constant 0 : index
    %313 = vector.load %arg15[%c0_120, %c0_121, %c0_122] : memref<1x1x8xf32, #tpu.memory_space<vmem>>, vector<1x1x8xf32>
    tpu.vector_store %arg15[%c0_120, %c0_121, %c0_122], %312 {strides = array<i32>} : memref<1x1x8xf32, #tpu.memory_space<vmem>>, vector<1x1x8xf32>,
    return
  }
  func.func @transform_0(%arg0: i32) -> (i32, i32) {
    %c0_i32 = arith.constant 0 : i32
    %c0_i32_0 = arith.constant 0 : i32
    %c0_i32_1 = arith.constant 0 : i32
    return %c0_i32, %c0_i32_0 : i32, i32
  }
  func.func @transform_1(%arg0: i32) -> (i32, i32, i32) {
    %c0_i32 = arith.constant 0 : i32
    %c0_i32_0 = arith.constant 0 : i32
    %c0_i32_1 = arith.constant 0 : i32
    return %arg0, %c0_i32, %c0_i32_0 : i32, i32, i32
  }
  func.func @transform_2(%arg0: i32) -> (i32, i32) {
    %c0_i32 = arith.constant 0 : i32
    %c0_i32_0 = arith.constant 0 : i32
    %c0_i32_1 = arith.constant 0 : i32
    return %c0_i32, %c0_i32_0 : i32, i32
  }
  func.func @transform_3(%arg0: i32) -> (i32, i32) {
    %c0_i32 = arith.constant 0 : i32
    %c0_i32_0 = arith.constant 0 : i32
    %c0_i32_1 = arith.constant 0 : i32
    return %c0_i32, %c0_i32_0 : i32, i32
  }
  func.func @transform_4(%arg0: i32) -> (i32, i32, i32, i32) {
    %c0_i32 = arith.constant 0 : i32
    %c0_i32_0 = arith.constant 0 : i32
    %c0_i32_1 = arith.constant 0 : i32
    %c0_i32_2 = arith.constant 0 : i32
    return %c0_i32, %arg0, %c0_i32_0, %c0_i32_1 : i32, i32, i32, i32
  }
  func.func @transform_5(%arg0: i32) -> (i32, i32, i32, i32) {
    %c0_i32 = arith.constant 0 : i32
    %c0_i32_0 = arith.constant 0 : i32
    %c0_i32_1 = arith.constant 0 : i32
    %c0_i32_2 = arith.constant 0 : i32
    return %c0_i32, %arg0, %c0_i32_0, %c0_i32_1 : i32, i32, i32, i32
  }
  func.func @transform_6(%arg0: i32) -> (i32, i32, i32) {
    %c0_i32 = arith.constant 0 : i32
    %c0_i32_0 = arith.constant 0 : i32
    %c0_i32_1 = arith.constant 0 : i32
    %c0_i32_2 = arith.constant 0 : i32
    return %c0_i32, %c0_i32_0, %c0_i32_1 : i32, i32, i32
  }
  func.func @transform_7(%arg0: i32) -> (i32, i32, i32) {
    %c0_i32 = arith.constant 0 : i32
    %c0_i32_0 = arith.constant 0 : i32
    %c0_i32_1 = arith.constant 0 : i32
    %c0_i32_2 = arith.constant 0 : i32
    return %c0_i32, %c0_i32_0, %c0_i32_1 : i32, i32, i32
  }
  func.func @transform_8(%arg0: i32) -> (i32, i32, i32) {
    %c0_i32 = arith.constant 0 : i32
    %c0_i32_0 = arith.constant 0 : i32
    %c0_i32_1 = arith.constant 0 : i32
    %c0_i32_2 = arith.constant 0 : i32
    return %c0_i32, %c0_i32_0, %c0_i32_1 : i32, i32, i32
  }
  func.func @transform_9(%arg0: i32) -> (i32, i32, i32) {
    %c0_i32 = arith.constant 0 : i32
    %c0_i32_0 = arith.constant 0 : i32
    %c0_i32_1 = arith.constant 0 : i32
    %c0_i32_2 = arith.constant 0 : i32
    return %c0_i32, %c0_i32_0, %c0_i32_1 : i32, i32, i32
  }
  func.func @transform_10(%arg0: i32) -> (i32, i32, i32) {
    %c0_i32 = arith.constant 0 : i32
    %c0_i32_0 = arith.constant 0 : i32
    %c0_i32_1 = arith.constant 0 : i32
    %c0_i32_2 = arith.constant 0 : i32
    return %c0_i32, %c0_i32_0, %c0_i32_1 : i32, i32, i32
  }
  func.func @transform_11(%arg0: i32) -> (i32, i32) {
    %c0_i32 = arith.constant 0 : i32
    %c0_i32_0 = arith.constant 0 : i32
    %c0_i32_1 = arith.constant 0 : i32
    return %c0_i32, %c0_i32_0 : i32, i32
  }
  func.func @transform_12(%arg0: i32) -> (i32, i32) {
    %c0_i32 = arith.constant 0 : i32
    %c0_i32_0 = arith.constant 0 : i32
    %c0_i32_1 = arith.constant 0 : i32
    return %c0_i32, %c0_i32_0 : i32, i32
  }
  func.func @transform_13(%arg0: i32) -> (i32, i32, i32) {
    %c0_i32 = arith.constant 0 : i32
    %c0_i32_0 = arith.constant 0 : i32
    %c0_i32_1 = arith.constant 0 : i32
    return %arg0, %c0_i32, %c0_i32_0 : i32, i32, i32
  }
  func.func @transform_14(%arg0: i32) -> (i32, i32, i32) {
    %c0_i32 = arith.constant 0 : i32
    %c0_i32_0 = arith.constant 0 : i32
    %c0_i32_1 = arith.constant 0 : i32
    return %arg0, %c0_i32, %c0_i32_0 : i32, i32, i32
  }
}

</mosaic_0001>

<bundles_post_ra>
// kernel: tpu_custom_call.1
= control target key start
LH: loop header
LB: loop body
LE: loop exit
PB: predicated region body
PF: predicated region fallthrough
CT: control target
= control target key end

     0   :  { %s4375_s0 = inlined_call_operand.vmem [shape: f32[1,64], index: 0, kind: input, shape index: {}]   ;;  %s4376_s1 = inlined_call_operand.vmem [shape: f32[2,32,1], index: 1, kind: input, shape index: {}]   ;;  %s4377_s2 = inlined_call_operand.vmem [shape: bf16[64,4], index: 2, kind: input, shape index: {}]   ;;  %s4378_s3 = inlined_call_operand.vmem [shape: bf16[4,64], index: 3, kind: input, shape index: {}]   ;;  %s4379_s4 = inlined_call_operand.vmem [shape: bf16[2,2,32,64], index: 4, kind: input, shape index: {}]   ;;  %s4380_s5 = inlined_call_operand.vmem [shape: bf16[2,2,32,64], index: 5, kind: input, shape index: {}]   ;;  %s4381_s6 = inlined_call_operand.vmem [shape: bf16[2,64,128], index: 6, kind: input, shape index: {}]   ;;  %s4382_s7 = inlined_call_operand.vmem [shape: bf16[2,64,64], index: 7, kind: input, shape index: {}]   ;;  %s4383_s8 = inlined_call_operand.vmem [shape: bf16[2,64,256], index: 8, kind: input, shape index: {}]   ;;  %s4384_s9 = inlined_call_operand.vmem [shape: bf16[2,256,64], index: 9, kind: input, shape index: {}]   ;;  %s4385_s10 = inlined_call_operand.vmem [shape: f32[2,1,768], index: 10, kind: input, shape index: {}]   ;;  %s4386_s11 = inlined_call_operand.vmem [shape: f32[1,128], index: 11, kind: input, shape index: {}]   ;;  %s4387_s12 = inlined_call_operand.vmem [shape: f32[64,8], index: 12, kind: input, shape index: {}]   ;;  %s4388_s13 = inlined_call_operand.hbm [shape: f32[2,1,64], index: 13, kind: output, shape index: {0}]   ;;  %s4389_s14 = inlined_call_operand.hbm [shape: f32[2,1,8], index: 14, kind: output, shape index: {1}]  }
   0x1   :  { %4396 = sst [smem:[#allocation13_spill]] %s4375_s0 }
   0x2   :  { %4397 = sst [smem:[#allocation14_spill]] %s4376_s1 }
   0x3   :  { %4398 = sst [smem:[#allocation15_spill]] %s4377_s2 }
   0x4   :  { %4399 = sst [smem:[#allocation16_spill]] %s4378_s3 }
   0x5   :  { %20 = vsyncpa [#allocation5], 0 }
   0x6   :  { %22 = vsyncpa [#allocation5 + $0x1], 0 }
   0x7   :  { %23 = vsyncpa [#allocation7], 0 }
   0x8   :  { %25 = vsyncpa [#allocation7 + $0x1], 0  ;;  %s3638_s29 = smov 0   ;;  %s3640_s30 = smov 0  }
   0x9   :  { %s3642_s15 = smov 0   ;;  %s3644_s16 = smov 0  }
   0xa LB: > { %s3659_s17 = sadd.s32 4294967295, %s3554_s16   ;;  %s2740_s18 = sadd.s32 4294967294, %s3554_s16   ;;  %s3554_s16 = sphi %s3644_s16, %s4413_s16   ;;  %s3550_s15 = sphi %s3642_s15, %s4417_s15   ;;  %s3546_s30 = sphi %s3640_s30, %s4416_s30   ;;  %s3542_s29 = sphi %s3638_s29, %s4415_s29  }
   0xb   : > { %s3663_s19 = sadd.s32 1, %s3554_s16   ;;  %s127_s20 = sadd.s32 1, %s3550_s15 }
   0xc   : > { %4400 = sst [smem:[#allocation10_spill]] %s3663_s19  ;;  %s124_s21 = ssub.s32 %s3554_s16, %s3663_s19 }
   0xd   : > { %p134_p0 = scmp.ne.s32.totalorder %s3550_s15, %s3546_s30  ;;  %p125_p1 = scmp.eq.s32.totalorder %s124_s21, 0 }
   0xe   : > { %p135_p2 = scmp.eq.s32.totalorder %s3554_s16, 0  ;;  %p337_p3 = scmp.eq.s32.totalorder %s3659_s17, 1 }
   0xf   : > { %p342_p4 = scmp.ne.s32.totalorder %s3546_s30, %s3542_s29  ;;  %p343_p7 = scmp.eq.s32.totalorder %s2740_s18, 1 }
  0x10   : > { %s3675_s22 = scalar_select %p125_p1, %s3550_s15, %s127_s20  }
  0x11   : > { %p3677_p5 = por %p135_p2, %p134_p0  ;;  %p3681_p6 = por %p337_p3, %p134_p0 }
  0x12   : > { %4401 = sst [smem:[#allocation11_spill]] %s3675_s22  ;;  %p3685_p8 = por %p343_p7, %p342_p4 }
  0x13   : > { %p2742_p9 = scmp.ge.s32.totalorder %s3554_s16, 2 }
  0x14   : > { %s4404_s25 = scalar_select %p3685_p8, 1, 0 }
  0x15   : > { %415 = sbr.rel (%p2742_p9) target bundleno = 42 (0x2a), region = 56 }
  0x16   : > { %4405 = sst [smem:[#allocation12_spill]] %s4404_s25 }
  0x1c   : > { %426 = sbr.rel (!%p3677_p5) target bundleno = 35 (0x23), region = 64  ;;  %s428_s26 = sand.u32 (%p3677_p5), 1, %s3550_s15  }
  0x1d   : > { %s2926_s27 = sshll.u32 (%p3677_p5), %s3554_s16, 4  ;;  %s2743_s28 = sshll.u32 (%p3677_p5), %s428_s26, 5 }
  0x1e   : > { %s433_s18 = scalar_lea.vmem (%p3677_p5), %s4379_s4, %s2926_s27  ;;  %s430_s22 = scalar_lea.vmem (%p3677_p5), [#allocation2], %s2743_s28 }
  0x1f   : > { %v449_v0 = vld [vmem:[%s433_s18] sm:$0xff] (%p3677_p5)   ;;  %v453_v1 = vld [vmem:[%s433_s18 + $0x8] sm:$0xff] (%p3677_p5)  }
  0x20   : > { %v457_v2 = vld [vmem:[%s433_s18 + $0x20] sm:$0xff] (%p3677_p5)   ;;  %450 = vst [vmem:[%s430_s22] sm:$0xff] (%p3677_p5), %v449_v0   ;;  %454 = vst [vmem:[%s430_s22 + $0x8] sm:$0xff] (%p3677_p5), %v453_v1   ;;  %v461_v3 = vld [vmem:[%s433_s18 + $0x28] sm:$0xff] (%p3677_p5)  }
  0x21   : > { %458 = vst [vmem:[%s430_s22 + $0x10] sm:$0xff] (%p3677_p5), %v457_v2   ;;  %462 = vst [vmem:[%s430_s22 + $0x18] sm:$0xff] (%p3677_p5), %v461_v3  }
  0x23 PF: > { %503 = sbr.rel (!%p3677_p5) target bundleno = 42 (0x2a), region = 105  ;;  %s505_s26 = sand.u32 (%p3677_p5), 1, %s3550_s15  }
  0x24   : > { %s2927_s19 = sshll.u32 (%p3677_p5), %s3554_s16, 4  ;;  %s2746_s25 = sshll.u32 (%p3677_p5), %s505_s26, 5 }
  0x25   : > { %s510_s21 = scalar_lea.vmem (%p3677_p5), %s4380_s5, %s2927_s19  ;;  %s507_s28 = scalar_lea.vmem (%p3677_p5), [#allocation3], %s2746_s25 }
  0x26   : > { %v526_v4 = vld [vmem:[%s510_s21] sm:$0xff] (%p3677_p5)   ;;  %v530_v5 = vld [vmem:[%s510_s21 + $0x8] sm:$0xff] (%p3677_p5)  }
  0x27   : > { %v534_v6 = vld [vmem:[%s510_s21 + $0x20] sm:$0xff] (%p3677_p5)   ;;  %527 = vst [vmem:[%s507_s28] sm:$0xff] (%p3677_p5), %v526_v4   ;;  %531 = vst [vmem:[%s507_s28 + $0x8] sm:$0xff] (%p3677_p5), %v530_v5   ;;  %v538_v7 = vld [vmem:[%s510_s21 + $0x28] sm:$0xff] (%p3677_p5)  }
  0x28   : > { %535 = vst [vmem:[%s507_s28 + $0x10] sm:$0xff] (%p3677_p5), %v534_v6   ;;  %539 = vst [vmem:[%s507_s28 + $0x18] sm:$0xff] (%p3677_p5), %v538_v7  }
  0x2a PF: > { %p2749_p10 = scmp.ge.s32.totalorder %s3554_s16, 1  ;;  %p579_p11 = scmp.lt.s32.totalorder %s3554_s16, 3 }
  0x2c   : > { %p580_p12 = pnand %p2749_p10, %p579_p11 }
  0x2d   : > { %s4406_s0 = sld [smem:[#allocation13_spill]] (!%p580_p12)  ;;  %vm683_vm0 = vcmask (!%p580_p12), 516096   ;;  %v3718_v10 = vld [vmem:[%s4385_s10] sm:$0x3f] (!%p580_p12)  ;;  %s4394_s18 = smov (!%p580_p12), 64   ;;  %v3557_v17 = vmov (!%p580_p12), 0.0   ;;  %v737_v46 = vlaneseq (!%p580_p12) }
  0x2e   : > { %583 = sbr.rel (%p580_p12) target bundleno = 4898 (0x1322), region = 146  ;;  %700 = vrot.lane.b32.xlu1 (!%p580_p12), %v3718_v10, %s4394_s18  ;;  %v3290_v16 = vld [vmem:[%s4381_s6] sm:$0xff] (!%p580_p12)   ;;  %3066 = vmatprep.subr.bf16.mxu1 (!%p580_p12), %v3557_v17  ;;  %v3291_v18 = vld [vmem:[%s4381_s6 + $0x8] sm:$0xff] (!%p580_p12)   ;;  %v3292_v19 = vld [vmem:[%s4381_s6 + $0x10] sm:$0xff] (!%p580_p12)   ;;  %vm3558_vm1 = vmmov (!%p580_p12), 0   ;;  %s3743_s25 = sand.u32 (!%p580_p12), 1, %s3546_s30  }
  0x2f   : > { %3067 = vmatpush3.bf16.msra.mxu1 (!%p580_p12), %v3290_v16  ;;  %v3293_v20 = vld [vmem:[%s4381_s6 + $0x18] sm:$0xff] (!%p580_p12)   ;;  %3074 = vmatprep.mubr.msk.bf16.mxu1 (!%p580_p12), %vm3558_vm1, %v3557_v17  ;;  %s4407_s2 = sld [smem:[#allocation15_spill]] (!%p580_p12)  ;;  %s4393_s27 = sshll.u32 (!%p580_p12), %s3743_s25, 5  ;;  %vm742_vm2 = vcmask (!%p580_p12), 523264   ;;  %v3559_v42 = vmov (!%p580_p12), 0   ;;  %v3811_v47 = vshrl.u32 (!%p580_p12), %v737_v46, 7 }
  0x30   : > { %3068 = vmatprep.subr.bf16.mxu1 (!%p580_p12), %v3557_v17  ;;  %s3754_s21 = scalar_lea.vmem (!%p580_p12), [#allocation2], %s4393_s27  ;;  %p650_p13 = scmp.lt.s32.totalorder (!%p580_p12), %s3659_s17, 1  ;;  %3268 = vset.pattern.permute.xlu1 (!%p580_p12), %v3559_v42  ;;  %vm1011_vm11 = vcmask (!%p580_p12), 31744   ;;  %vm1135_vm12 = vcmask (!%p580_p12), 1041408  }
  0x31   : > { %v2961_v22 = vld [vmem:[%s3754_s21 + $0x8] sm:$0xff] (!%p580_p12)   ;;  %v2930_v23 = vld [vmem:[%s3754_s21] sm:$0xff] (!%p580_p12)   ;;  %3269 = vset.pattern.permute.xlu0 (!%p580_p12), %v3559_v42  ;;  %s4408_s1 = sld [smem:[#allocation14_spill]] (!%p580_p12)  ;;  %v739_v48 = vsub.s32 (!%p580_p12), 1, %v3811_v47  ;;  %v792_v52 = vsub.s32 (!%p580_p12), 0, %v3811_v47  ;;  %s4409_s3 = sld [smem:[#allocation16_spill]] (!%p580_p12) }
  0x32   : > { %v3758_v24 = vunpack.c.l.bf16 (!%p580_p12), %v2961_v22  ;;  %v3760_v25 = vunpack.c.h.bf16 (!%p580_p12), %v2961_v22  ;;  %v3762_v26 = vunpack.c.l.bf16 (!%p580_p12), %v2930_v23  ;;  %v3764_v27 = vunpack.c.h.bf16 (!%p580_p12), %v2930_v23  ;;  %s4410_s20 = sshll.u32 (!%p580_p12), %s3743_s25, 5 }
  0x33   : > { %v3711_v8 = vld [vmem:[%s4406_s0] sm:$0x1] (!%p580_p12)  ;;  %3069 = vmatpush3.bf16.msra.mxu1 (!%p580_p12), %v3291_v18  ;;  %v740_v49 = vrot.slane (!%p580_p12), %v3718_v10, %v739_v48  ;;  %s4411_s0 = smov (!%p580_p12), 64  }
  0x34   : > { %v684_v9 = vsel (!%p580_p12), %vm683_vm0, %v3711_v8, 0.0  ;;  %3070 = vmatprep.subr.bf16.mxu1 (!%p580_p12), %v3557_v17  ;;  %v3253_v28 = vpack.i.bf16 (!%p580_p12), %v3760_v25, %v3758_v24  ;;  %v3248_v29 = vpack.i.bf16 (!%p580_p12), %v3764_v27, %v3762_v26 }
  0x35   : > { %685 = vadd.xlane.f32.xlu0 %v684_v9  ;;  %v3748_v21 = vld [vmem:[%s4407_s2] sm:$0xff]   ;;  %v3779_v39 = vld [vmem:[%s4407_s2 + $0x8] sm:$0xff]   ;;  %v3788_v40 = vld [vmem:[%s4407_s2 + $0x10] sm:$0xff]   ;;  %s651_s28 = scalar_select %p650_p13, %s3659_s17, 1 }
  0x36   : > { %3249 = vrot.lane.b32.xlu1 %v3248_v29, %s4394_s18  ;;  %v3795_v41 = vld [vmem:[%s4407_s2 + $0x18] sm:$0xff]  }
  0x37   : > { %3071 = vmatpush3.bf16.msra.mxu1 %v3292_v19  ;;  %s2928_s22 = sshll.u32 %s651_s28, 5  ;;  %s3929_s28 = scalar_lea.vmem [#allocation3], %s4410_s20 }
  0x38   : > { %3072 = vmatprep.subr.bf16.mxu1 %v3557_v17  ;;  %s3806_s27 = scalar_lea.vmem %s4408_s1, %s2928_s22  ;;  %s643_s20 = scalar_lea.vmem [#allocation4], %s3743_s25 }
  0x39   : > { %v660_v43 = vld [vmem:[%s3806_s27 + $0x18] sm:$0xff]  ;;  %v659_v45 = vld [vmem:[%s3806_s27 + $0x10] sm:$0xff]  ;;  %v657_v16 = vld [vmem:[%s3806_s27] sm:$0xff]  ;;  %s2608_s19 = sshll.u32 %s643_s20, 4  ;;  %s2609_s19 = int_to_ptr.vmem [resolvable:$true] %s2608_s19 }
  0x3a   : > { %vm664_vm3 = vcmp.gt.f32.partialorder %v660_v43, 0.5  ;;  %vm661_vm4 = vcmp.gt.f32.partialorder %v657_v16, 0.5  ;;  %v658_v19 = vld [vmem:[%s3806_s27 + $0x8] sm:$0xff]  ;;  %vm663_vm6 = vcmp.gt.f32.partialorder %v659_v45, 0.5  ;;  %s2592_s27 = scalar_lea.sflag [#allocation5], %s3743_s25 }
  0x3b   : > { %3073 = vmatpush3.bf16.msra.mxu1 %v3293_v20  ;;  %v990_v44 = vsel %vm664_vm3, 1, %v3559_v42  ;;  %v987_v20 = vsel %vm661_vm4, 1, %v3559_v42  ;;  %vm662_vm5 = vcmp.gt.f32.partialorder %v658_v19, 0.5  ;;  %v989_v23 = vsel %vm663_vm6, 1, %v3559_v42 }
  0x3c   : > { %3078 = vmatprep.subr.bf16.mxu1 %v3748_v21  ;;  %v988_v22 = vsel %vm662_vm5, 1, %v3559_v42 }
  0xa0   : > { %v3772_v35 = vpop.permute.xlu1 %700 }
  0xa8   : > { %v3250_v51 = vpop.permute.xlu1 %3249 }
  0xa9   : > { %v3252_v58 = vunpack.i.h.bf16 %v3250_v51  ;;  %v3251_v59 = vunpack.i.l.bf16 %v3250_v51 }
  0xc2   : > { %v686_v11 = vpop.xlane.xlu0 %685 }
  0xc3   : > { %v688_v12 = vmul.f32 0.015625, %v686_v11 }
  0xc5   : > { %v689_v13 = vsub.f32 %v3711_v8, %v688_v12 }
  0xc7   : > { %v690_v14 = vmul.f32 %v689_v13, %v689_v13 }
  0xc9   : > { %v691_v15 = vsel %vm683_vm0, %v690_v14, 0.0 }
  0xca   : > { %692 = vadd.xlane.f32.xlu0 %v691_v15 }
  0xe0   : > { %3254 = vrot.lane.b32.xlu0 %v3253_v28, %s4394_s18 }
  0xe4   : > { %1001 = vperm.xlu0 %3269, %v990_v44  }
  0xe8   : > { %1107 = vperm.xlu0 %3269, %v659_v45  }
 0x157   : > { %v693_v30 = vpop.xlane.xlu0 %692 }
 0x158   : > { %v694_v31 = vmul.f32 0.015625, %v693_v30 }
 0x15a   : > { %v695_v32 = vadd.f32 1e-05, %v694_v31 }
 0x15b   : > { %v3255_v50 = vpop.permute.xlu0 %3254 }
 0x15c   : > { %3366 = vrsqrt.f32 %v695_v32  ;;  %v3257_v54 = vunpack.i.h.bf16 %v3255_v50  ;;  %v3256_v57 = vunpack.i.l.bf16 %v3255_v50 }
 0x166   : > { %v3367_v33 = vpop.eup %3366 }
 0x167   : > { %v697_v34 = vmul.f32 %v3367_v33, %v689_v13 }
 0x169   : > { %v698_v36 = vmul.f32 %v697_v34, %v3718_v10 }
 0x16b   : > { %v703_v37 = vadd.f32 %v3772_v35, %v698_v36 }
 0x16d   : > { %v704_v38 = vpack.c.bf16 %v703_v37, %v703_v37 }
 0x16f   : > { %3075 = vmatmul.mubr.msk.bf16.vlgmr.msra.gmra.mrb[0].mxu1 %vm742_vm2, %v704_v38 }
 0x170   : > { %3079 = vmatpush3.bf16.msra.mxu1 %v3748_v21 }
 0x171   : > { %3080 = vmatprep.subr.bf16.mxu1 %v3779_v39 }
 0x174   : > { %3081 = vmatpush3.bf16.msra.mxu1 %v3779_v39 }
 0x175   : > { %3082 = vmatprep.subr.bf16.mxu1 %v3788_v40 }
 0x178   : > { %3083 = vmatpush3.bf16.msra.mxu1 %v3788_v40 }
 0x179   : > { %3084 = vmatprep.subr.bf16.mxu1 %v3795_v41 }
 0x17c   : > { %3085 = vmatpush3.bf16.msra.mxu1 %v3795_v41 }
 0x242   : > { %v780_v53 = vpop.f32.mrb[0].mxu1 }
 0x243   : > { %v781_v55 = vadd.f32 %v780_v53, %v740_v49  ;;  %v3076_v56 = vpop.f32.mrb[1].mxu1  ;;  %v3849_v49 = vpop.permute.xlu0 %1001 }
 0x244   : > { %v783_v60 = vpop.f32.mrb[2].mxu1  ;;  %vm1006_vm9 = vcmp.eq.s32.totalorder %v3849_v49, 1 }
 0x245   : > { %v793_v61 = vrot.slane %v781_v55, %v792_v52  ;;  %v3077_v62 = vpop.f32.mrb[3].mxu1 }
 0x247   : > { %v825_v63 = vsub.f32 %v793_v61, %v3257_v54  ;;  %v824_v0 = vsub.f32 %v793_v61, %v3256_v57  ;;  %v823_v1 = vsub.f32 %v793_v61, %v3252_v58  ;;  %v822_v2 = vsub.f32 %v793_v61, %v3251_v59  ;;  %799 = vrot.lane.b32.xlu1 %v793_v61, %s4394_s18 }
 0x248   : > { %v794_v3 = vmul.f32 %v3762_v26, %v793_v61  ;;  %v795_v4 = vmul.f32 %v3764_v27, %v793_v61  ;;  %v796_v5 = vmul.f32 %v3758_v24, %v793_v61  ;;  %v797_v6 = vmul.f32 %v3760_v25, %v793_v61 }
 0x249   : > { %v827_v7 = vand.u32 2147483647, %v823_v1  ;;  %v826_v9 = vand.u32 2147483647, %v822_v2  ;;  %v829_v13 = vand.u32 2147483647, %v825_v63 }
 0x24a   : > { %v846_v11 = vpack.c.bf16 %v795_v4, %v794_v3  ;;  %v847_v12 = vpack.c.bf16 %v797_v6, %v796_v5  ;;  %v828_v14 = vand.u32 2147483647, %v824_v0 }
 0x24b   : > { %v3258_v15 = vpack.i.bf16 %v827_v7, %v826_v9 }
 0x24c   : > { %3086 = vmatprep.mubr.msk.bf16.mxu1 %vm742_vm2, %v846_v11  ;;  %v3263_v18 = vpack.i.bf16 %v829_v13, %v828_v14 }
 0x24d   : > { %3087 = vmatmul.mubr.msk.bf16.vlgmr.msra.gmra.mrb[4].mxu1 %vm742_vm2, %v847_v12  ;;  %3259 = vrot.lane.b32.xlu1 %v3258_v15, %s4394_s18 }
 0x251   : > { %3264 = vrot.lane.b32.xlu1 %v3263_v18, %s4394_s18  ;;  %s2922_s18 = sshll.u32 %s3659_s17, 4 }
 0x252   : > { %s4305_s23 = scalar_lea.hbm %s4388_s13, %s2922_s18 }
 0x255   : > { %992 = vperm.xlu1 %3268, %v987_v20  }
 0x259   : > { %995 = vperm.xlu1 %3268, %v988_v22  }
 0x25d   : > { %998 = vperm.xlu1 %3268, %v989_v23  }
 0x261   : > { %1097 = vperm.xlu1 %3268, %v657_v16  }
 0x265   : > { %1102 = vperm.xlu1 %3268, %v658_v19  }
 0x269   : > { %1112 = vperm.xlu1 %3268, %v660_v43  }
 0x2b9   : > { %v800_v28 = vpop.permute.xlu1 %799 }
 0x2ba   : > { %v802_v29 = vmul.f32 %v3762_v26, %v800_v28  ;;  %v803_v30 = vmul.f32 %v3764_v27, %v800_v28  ;;  %v804_v31 = vmul.f32 %v3758_v24, %v800_v28  ;;  %v805_v32 = vmul.f32 %v3760_v25, %v800_v28  ;;  %v3870_v28 = vld [vmem:[%s4409_s3] sm:$0x3]  ;;  %s3460_s3 = scalar_lea.vmem %s2609_s19, 16 }
 0x2bb   : > { %3197 = vmatprep.subr.msk.bf16.mxu0 %vm1135_vm12, %v3870_v28  ;;  %p3461_p0 = scmp.ne.s32.totalorder %s2609_s19, %s3460_s3 }
 0x2bc   : > { %v848_v33 = vpack.c.bf16 %v803_v30, %v802_v29  ;;  %v849_v34 = vpack.c.bf16 %v805_v32, %v804_v31  ;;  %v3876_v29 = vsel %vm1135_vm12, %v3870_v28, 0 }
 0x2bd   : > { %3099 = vmatpush3.bf16.msra.mxu0 %v3876_v29  ;;  %p3462_p1 = pnand %p3461_p0, %p3681_p6 }
 0x2be   : > { %3090 = vmatprep.mubr.msk.bf16.mxu1 %vm742_vm2, %v848_v33  ;;  %3104 = vmatprep.subr.bf16.mxu0 %v3557_v17 }
 0x2bf   : > { %3091 = vmatmul.mubr.msk.bf16.gmra.mrb[8].mxu1 %vm742_vm2, %v849_v34  ;;  %v3260_v36 = vpop.permute.xlu1 %3259  ;;  %p3463_p2 = pneg %p3462_p1 }
 0x2c0   : > { %v3262_v37 = vunpack.i.h.bf16 %v3260_v36  ;;  %v3261_v38 = vunpack.i.l.bf16 %v3260_v36 }
 0x2c2   : > { %v850_v44 = vpack.c.bf16 %v3262_v37, %v3261_v38 }
 0x2c3   : > { %v3265_v43 = vpop.permute.xlu1 %3264 }
 0x2c4   : > { %v3267_v45 = vunpack.i.h.bf16 %v3265_v43  ;;  %v3266_v46 = vunpack.i.l.bf16 %v3265_v43  ;;  %3094 = vmatprep.mubr.msk.bf16.mxu1 %vm742_vm2, %v850_v44 }
 0x2c6   : > { %v851_v26 = vpack.c.bf16 %v3267_v45, %v3266_v46 }
 0x2c8   : > { %3095 = vmatmul.mubr.msk.bf16.gmra.mrb[12].mxu1 %vm742_vm2, %v851_v26 }
 0x2c9   : > { %1414 = vmatprep.mubr.bf16.mxu1 %v3559_v42 }
 0x2d4   : > { %v3843_v24 = vpop.permute.xlu1 %992 }
 0x2d5   : > { %vm1003_vm8 = vcmp.eq.s32.totalorder %v3843_v24, 1 }
 0x2d8   : > { %v3845_v25 = vpop.permute.xlu1 %995 }
 0x2d9   : > { %vm1004_vm10 = vcmp.eq.s32.totalorder %v3845_v25, 1 }
 0x2dc   : > { %v3847_v27 = vpop.permute.xlu1 %998 }
 0x2dd   : > { %vm1005_vm7 = vcmp.eq.s32.totalorder %v3847_v27, 1 }
 0x320   : > { %v3088_v50 = vpop.f32.mrb[4].mxu1 }
 0x321   : > { %v977_v51 = vmul.f32 0.25, %v3088_v50  ;;  %v928_v53 = vpop.f32.mrb[5].mxu1 }
 0x322   : > { %v975_v54 = vmul.f32 0.25, %v928_v53  ;;  %v3089_v55 = vpop.f32.mrb[6].mxu1 }
 0x323   : > { %v1009_v56 = vsel %vm1005_vm7, %v977_v51, -inf  ;;  %v978_v57 = vmul.f32 0.25, %v3089_v55  ;;  %v931_v58 = vpop.f32.mrb[7].mxu1 }
 0x324   : > { %v1007_v59 = vsel %vm1003_vm8, %v975_v54, -inf  ;;  %v976_v60 = vmul.f32 0.25, %v931_v58  ;;  %v1014_v62 = vsel %vm1011_vm11, %v1009_v56, -inf }
 0x325   : > { %v1010_v61 = vsel %vm1006_vm9, %v978_v57, -inf  ;;  %v1012_v1 = vsel %vm1011_vm11, %v1007_v59, -inf }
 0x326   : > { %v1015_v63 = vsel %vm1011_vm11, %v1010_v61, -inf  ;;  %v1008_v0 = vsel %vm1004_vm10, %v976_v60, -inf }
 0x327   : > { %v1017_v2 = vmax.f32 %v1014_v62, %v1015_v63  ;;  %v1013_v3 = vsel %vm1011_vm11, %v1008_v0, -inf }
 0x328   : > { %v1016_v4 = vmax.f32 %v1012_v1, %v1013_v3 }
 0x32a   : > { %v1018_v5 = vmax.f32 %v1016_v4, %v1017_v2 }
 0x32c   : > { %v1019_v6 = vrot.slane %v1018_v5, 4 }
 0x32e   : > { %v1020_v7 = vmax.f32 %v1018_v5, %v1019_v6 }
 0x330   : > { %v1021_v9 = vrot.slane %v1020_v7, 2 }
 0x332   : > { %v1022_v11 = vmax.f32 %v1020_v7, %v1021_v9 }
 0x334   : > { %v1023_v12 = vrot.slane %v1022_v11, 1 }
 0x336   : > { %v1024_v13 = vmax.f32 %v1022_v11, %v1023_v12 }
 0x338   : > { %v1025_v14 = vsub.f32 %v1007_v59, %v1024_v13  ;;  %v1026_v15 = vsub.f32 %v1008_v0, %v1024_v13  ;;  %v1027_v16 = vsub.f32 %v1009_v56, %v1024_v13  ;;  %v1028_v18 = vsub.f32 %v1010_v61, %v1024_v13 }
 0x33a   : > { %v1029_v19 = vmul.f32 1.442695, %v1025_v14  ;;  %v1031_v20 = vmul.f32 1.442695, %v1026_v15  ;;  %v1033_v22 = vmul.f32 1.442695, %v1027_v16 }
 0x33b   : > { %v1035_v23 = vmul.f32 1.442695, %v1028_v18 }
 0x33c   : > { %3368 = vpow2.f32 %v1029_v19 }
 0x33d   : > { %3370 = vpow2.f32 %v1031_v20 }
 0x33e   : > { %3372 = vpow2.f32 %v1033_v22 }
 0x33f   : > { %3374 = vpow2.f32 %v1035_v23 }
 0x346   : > { %v3369_v30 = vpop.eup %3368 }
 0x347   : > { %v3371_v31 = vpop.eup %3370  ;;  %v1037_v32 = vsel %vm1011_vm11, %v3369_v30, 0.0 }
 0x348   : > { %v3373_v33 = vpop.eup %3372  ;;  %v1038_v34 = vsel %vm1011_vm11, %v3371_v31, 0.0 }
 0x349   : > { %v3375_v36 = vpop.eup %3374  ;;  %v1039_v37 = vadd.f32 %v1038_v34, %v1037_v32  ;;  %v1040_v38 = vsel %vm1011_vm11, %v3373_v33, 0.0 }
 0x34a   : > { %v1042_v43 = vsel %vm1011_vm11, %v3375_v36, 0.0 }
 0x34b   : > { %v1041_v44 = vadd.f32 %v1040_v38, %v1039_v37 }
 0x34d   : > { %v1043_v45 = vadd.f32 %v1042_v43, %v1041_v44  ;;  %v3892_v44 = vpop.permute.xlu1 %1097 }
 0x34f   : > { %v1044_v46 = vrot.slane %v1043_v45, 4 }
 0x351   : > { %v1045_v26 = vadd.f32 %v1044_v46, %v1043_v45 }
 0x353   : > { %v1046_v50 = vrot.slane %v1045_v26, 2 }
 0x355   : > { %v1047_v51 = vadd.f32 %v1046_v50, %v1045_v26  ;;  %v3894_v26 = vpop.permute.xlu1 %1102 }
 0x357   : > { %v1048_v53 = vrot.slane %v1047_v51, 1 }
 0x359   : > { %v1049_v54 = vadd.f32 %v1048_v53, %v1047_v51 }
 0x35b   : > { %3376 = vrcp.f32 %v1049_v54 }
 0x365   : > { %v3377_v55 = vpop.eup %3376 }
 0x366   : > { %v3884_v56 = vmul.f32 %v3377_v55, %v3369_v30  ;;  %v3886_v57 = vmul.f32 %v3377_v55, %v3371_v31  ;;  %v3888_v58 = vmul.f32 %v3377_v55, %v3373_v33  ;;  %v3890_v59 = vmul.f32 %v3377_v55, %v3375_v36 }
 0x392   : > { %v3092_v60 = vpop.f32.mrb[8].mxu1 }
 0x393   : > { %v944_v61 = vpop.f32.mrb[9].mxu1  ;;  %v981_v19 = vmul.f32 0.25, %v3092_v60 }
 0x394   : > { %v3093_v62 = vpop.f32.mrb[10].mxu1  ;;  %v979_v20 = vmul.f32 0.25, %v944_v61 }
 0x395   : > { %v947_v63 = vpop.f32.mrb[11].mxu1  ;;  %v982_v34 = vmul.f32 0.25, %v3093_v62 }
 0x396   : > { %v980_v37 = vmul.f32 0.25, %v947_v63  ;;  %v3896_v63 = vpop.permute.xlu0 %1107 }
 0x39b   : > { %v3096_v0 = vpop.f32.mrb[12].mxu1 }
 0x39c   : > { %v985_v1 = vmul.f32 0.25, %v3096_v0  ;;  %v960_v2 = vpop.f32.mrb[13].mxu1 }
 0x39d   : > { %v983_v3 = vmul.f32 0.25, %v960_v2  ;;  %v3097_v4 = vpop.f32.mrb[14].mxu1 }
 0x39e   : > { %v1061_v5 = vsub.f32 0.0, %v985_v1  ;;  %v986_v6 = vmul.f32 0.25, %v3097_v4  ;;  %v963_v7 = vpop.f32.mrb[15].mxu1 }
 0x39f   : > { %v1059_v9 = vsub.f32 0.0, %v983_v3  ;;  %v984_v11 = vmul.f32 0.25, %v963_v7 }
 0x3a0   : > { %v2771_v12 = vmul.f32 -1.442695, %v1061_v5  ;;  %v1062_v13 = vsub.f32 0.0, %v986_v6  ;;  %v3899_v5 = vpop.permute.xlu1 %1112 }
 0x3a1   : > { %v2769_v14 = vmul.f32 -1.442695, %v1059_v9  ;;  %v1060_v15 = vsub.f32 0.0, %v984_v11 }
 0x3a2   : > { %3378 = vpow2.f32 %v2771_v12  ;;  %v2772_v16 = vmul.f32 -1.442695, %v1062_v13 }
 0x3a3   : > { %3380 = vpow2.f32 %v2769_v14  ;;  %v2770_v18 = vmul.f32 -1.442695, %v1060_v15 }
 0x3a4   : > { %3382 = vpow2.f32 %v2772_v16 }
 0x3a5   : > { %3384 = vpow2.f32 %v2770_v18 }
 0x3a6   : > { %3386 = vtanh.f32 %v981_v19 }
 0x3a7   : > { %3388 = vtanh.f32 %v979_v20 }
 0x3ac   : > { %v3379_v22 = vpop.eup %3378 }
 0x3ad   : > { %v3381_v23 = vpop.eup %3380  ;;  %v1077_v30 = vadd.f32 1.0, %v3379_v22 }
 0x3ae   : > { %v3383_v31 = vpop.eup %3382  ;;  %v1075_v32 = vadd.f32 1.0, %v3381_v23 }
 0x3af   : > { %v3385_v33 = vpop.eup %3384  ;;  %3390 = vrcp.f32 %v1077_v30  ;;  %v1078_v36 = vadd.f32 1.0, %v3383_v31  ;;  %v2938_v30 = vld [vmem:[%s3929_s28] sm:$0xff]   ;;  %v2962_v31 = vld [vmem:[%s3929_s28 + $0x8] sm:$0xff]  }
 0x3b0   : > { %3392 = vrcp.f32 %v1075_v32  ;;  %v1076_v38 = vadd.f32 1.0, %v3385_v33  ;;  %v3387_v43 = vpop.eup %3386  ;;  %v2939_v32 = vunpack.c.l.bf16 %v2938_v30  ;;  %v2943_v33 = vunpack.c.l.bf16 %v2962_v31 }
 0x3b1   : > { %3394 = vrcp.f32 %v1078_v36  ;;  %v3389_v45 = vpop.eup %3388  ;;  %v2940_v36 = vunpack.c.h.bf16 %v2938_v30  ;;  %v3307_v30 = vld [vmem:[%s4383_s8 + $0x14] ss:$8 sps:$4 sm:$0xff]  }
 0x3b2   : > { %3396 = vrcp.f32 %v1076_v38 }
 0x3b3   : > { %3398 = vtanh.f32 %v982_v34 }
 0x3b4   : > { %3400 = vtanh.f32 %v980_v37 }
 0x3b9   : > { %v3391_v46 = vpop.eup %3390 }
 0x3ba   : > { %v3393_v50 = vpop.eup %3392  ;;  %v1089_v51 = vmul.f32 2.0, %v3391_v46 }
 0x3bb   : > { %v3395_v53 = vpop.eup %3394  ;;  %v1087_v54 = vmul.f32 2.0, %v3393_v50 }
 0x3bc   : > { %v3397_v55 = vpop.eup %3396  ;;  %v1093_v60 = vmul.f32 %v3387_v43, %v1089_v51  ;;  %v1090_v61 = vmul.f32 2.0, %v3395_v53  ;;  %v2944_v43 = vunpack.c.h.bf16 %v2962_v31  ;;  %v3305_v31 = vld [vmem:[%s4383_s8 + $0x10] ss:$8 sps:$4 sm:$0xff]  }
 0x3bd   : > { %v3399_v62 = vpop.eup %3398  ;;  %v1088_v0 = vmul.f32 2.0, %v3397_v55  ;;  %v1091_v1 = vmul.f32 %v3389_v45, %v1087_v54 }
 0x3be   : > { %v3401_v2 = vpop.eup %3400  ;;  %v1094_v3 = vmul.f32 %v3399_v62, %v1090_v61  ;;  %v1117_v4 = vmul.f32 %v3896_v63, %v1093_v60 }
 0x3bf   : > { %v1092_v6 = vmul.f32 %v3401_v2, %v1088_v0  ;;  %v1115_v7 = vmul.f32 %v3892_v44, %v1091_v1 }
 0x3c0   : > { %v1118_v9 = vmul.f32 %v3899_v5, %v1094_v3  ;;  %v1121_v11 = vadd.f32 %v1117_v4, %v3888_v58  ;;  %v3300_v58 = vld [vmem:[%s4382_s7 + $0x10] sm:$0xff]  }
 0x3c1   : > { %v1116_v12 = vmul.f32 %v3894_v26, %v1092_v6  ;;  %v1119_v13 = vadd.f32 %v1115_v7, %v3884_v56  ;;  %v3298_v56 = vld [vmem:[%s4382_s7] sm:$0xff]  }
 0x3c2   : > { %v1122_v14 = vadd.f32 %v1118_v9, %v3890_v59  ;;  %v1125_v16 = vmul.f32 0.5, %v1121_v11  ;;  %v3301_v59 = vld [vmem:[%s4382_s7 + $0x18] sm:$0xff]  }
 0x3c3   : > { %v1120_v15 = vadd.f32 %v1116_v12, %v3886_v57  ;;  %v1123_v19 = vmul.f32 0.5, %v1119_v13  ;;  %v3299_v57 = vld [vmem:[%s4382_s7 + $0x8] sm:$0xff]   ;;  %v1286_v12 = vrot.slane %v3718_v10, 2 }
 0x3c4   : > { %v1126_v18 = vmul.f32 0.5, %v1122_v14 }
 0x3c5   : > { %v1124_v20 = vmul.f32 0.5, %v1120_v15 }
 0x3c6   : > { %v1128_v22 = vpack.c.bf16 %v1126_v18, %v1125_v16 }
 0x3c7   : > { %v1127_v23 = vpack.c.bf16 %v1124_v20, %v1123_v19 }
 0x3c9   : > { %3100 = vmatprep.mubr.msk.bf16.mxu0 %vm1011_vm11, %v1127_v23  ;;  %v3304_v23 = vld [vmem:[%s4383_s8 + $0x4] ss:$8 sps:$4 sm:$0xff]  }
 0x3ca   : > { %3101 = vmatmul.mubr.msk.bf16.vlgmr.msra.gmra.mrb[0].mxu0 %vm1011_vm11, %v1128_v22  ;;  %v3302_v22 = vld [vmem:[%s4383_s8] ss:$8 sps:$4 sm:$0xff]   ;;  %1382 = vmatprep.subr.bf16.mxu1 %v3304_v23  ;;  %v3329_v23 = vld [vmem:[%s4384_s9 + $0x38] sm:$0xff]  }
 0x3cb   : > { %3112 = vmatprep.mubr.msk.bf16.mxu0 %vm3558_vm1, %v3557_v17  ;;  %3105 = vmatpush3.bf16.msra.mxu0 %v3298_v56 }
 0x3cc   : > { %3106 = vmatprep.subr.bf16.mxu0 %v3557_v17  ;;  %1383 = vmatpush1.bf16.msra.mxu1 %v3302_v22  ;;  %v3328_v22 = vld [vmem:[%s4384_s9 + $0x78] sm:$0xff]  }
 0x3cd   : > { %1384 = vmatprep.subr.bf16.mxu1 %v3307_v30 }
 0x3cf   : > { %3107 = vmatpush3.bf16.msra.mxu0 %v3299_v57 }
 0x3d0   : > { %3108 = vmatprep.subr.bf16.mxu0 %v3557_v17  ;;  %1385 = vmatpush1.bf16.msra.mxu1 %v3305_v31 }
 0x3d3   : > { %3109 = vmatpush3.bf16.msra.mxu0 %v3300_v58 }
 0x3d4   : > { %3110 = vmatprep.subr.bf16.mxu0 %v3557_v17 }
 0x3d7   : > { %3111 = vmatpush3.bf16.msra.mxu0 %v3301_v59 }
 0x49d   : > { %v3102_v34 = vpop.f32.mrb[0].mxu0 }
 0x49e   : > { %v1173_v37 = vpop.f32.mrb[1].mxu0  ;;  %v1194_v50 = vmul.f32 %v3102_v34, %v2943_v33  ;;  %v3308_v33 = vld [vmem:[%s4383_s8 + $0x20] ss:$8 sps:$4 sm:$0xff]   ;;  %v3313_v34 = vld [vmem:[%s4383_s8 + $0x34] ss:$8 sps:$4 sm:$0xff]  }
 0x49f   : > { %v1192_v38 = vmul.f32 %v2939_v32, %v1173_v37  ;;  %v3103_v45 = vpop.f32.mrb[2].mxu0  ;;  %v3310_v32 = vld [vmem:[%s4383_s8 + $0x24] ss:$8 sps:$4 sm:$0xff]   ;;  %v1363_v37 = vsub.s32 4, %v3811_v47 }
 0x4a0   : > { %v1176_v46 = vpop.f32.mrb[3].mxu0  ;;  %v1195_v54 = vmul.f32 %v3103_v45, %v2944_v43  ;;  %v1199_v61 = vsel %vm742_vm2, %v1194_v50, 0.0  ;;  %1386 = vmatprep.subr.bf16.mxu1 %v3310_v32  ;;  %v1367_v43 = vsub.s32 5, %v3811_v47 }
 0x4a1   : > { %v1193_v51 = vmul.f32 %v2940_v36, %v1176_v46  ;;  %v1196_v53 = vsel %vm742_vm2, %v1192_v38, 0.0  ;;  %1387 = vmatpush1.bf16.msra.mxu1 %v3308_v33  ;;  %v3311_v36 = vld [vmem:[%s4383_s8 + $0x30] ss:$8 sps:$4 sm:$0xff]   ;;  %v1359_v38 = vsub.s32 3, %v3811_v47  ;;  %v1364_v45 = vrot.slane %v3718_v10, %v1363_v37  ;;  %v3350_v47 = vld [vmem:[%s4384_s9 + $0xc0] sm:$0xff]  }
 0x4a2   : > { %v1201_v0 = vsel %vm742_vm2, %v1195_v54, 0.0  ;;  %1388 = vmatprep.subr.bf16.mxu1 %v3313_v34  ;;  %v1368_v46 = vrot.slane %v3718_v10, %v1367_v43 }
 0x4a3   : > { %v1197_v55 = vsel %vm742_vm2, %v1193_v51, 0.0  ;;  %v1360_v50 = vrot.slane %v3718_v10, %v1359_v38 }
 0x4a4   : > { %v1198_v60 = vadd.f32 %v1197_v55, %v1196_v53 }
 0x4a5   : > { %1389 = vmatpush1.bf16.msra.mxu1 %v3311_v36 }
 0x4a6   : > { %v1200_v62 = vadd.f32 %v1199_v61, %v1198_v60  ;;  %3116 = vmatprep.subr.bf16.mxu1 %v3557_v17  ;;  %v1302_v60 = vrot.slane %v3772_v35, 2  ;;  %v1305_v61 = vrot.slane %v3718_v10, 3  ;;  %v3316_v10 = vld [vmem:[%s4384_s9 + $0x48] sm:$0xff]  }
 0x4a8   : > { %v1202_v1 = vadd.f32 %v1201_v0, %v1200_v62 }
 0x4aa   : > { %v1203_v2 = vrot.slane %v1202_v1, 4 }
 0x4ac   : > { %v1204_v3 = vadd.f32 %v1203_v2, %v1202_v1 }
 0x4ae   : > { %v1205_v4 = vrot.slane %v1204_v3, 2 }
 0x4b0   : > { %v1206_v6 = vadd.f32 %v1205_v4, %v1204_v3  ;;  %v3314_v3 = vld [vmem:[%s4384_s9 + $0x40] sm:$0xff]  }
 0x4b1   : > { %v3315_v4 = vld [vmem:[%s4384_s9] sm:$0xff]   ;;  %2990 = vmatprep.subr.bf16.mxu0 %v3314_v3 }
 0x4b2   : > { %v1207_v7 = vrot.slane %v1206_v6, 1 }
 0x4b4   : > { %v1208_v9 = vadd.f32 %v1207_v7, %v1206_v6  ;;  %v3317_v6 = vld [vmem:[%s4384_s9 + $0x8] sm:$0xff]   ;;  %v3318_v7 = vld [vmem:[%s4384_s9 + $0x50] sm:$0xff]  }
 0x4b6   : > { %v1209_v11 = vpack.c.bf16 %v1208_v9, %v1208_v9  ;;  %v3319_v9 = vld [vmem:[%s4384_s9 + $0x10] sm:$0xff]  }
 0x4b8   : > { %3113 = vmatmul.mubr.msk.bf16.vlgmr.msra.gmra.mrb[4].mxu0 %vm742_vm2, %v1209_v11  ;;  %v3320_v11 = vld [vmem:[%s4384_s9 + $0x58] sm:$0xff]  }
 0x4b9   : > { %2991 = vmatpush3.bf16.msra.mxu0 %v3315_v4 }
 0x4ba   : > { %2992 = vmatprep.subr.bf16.mxu0 %v3316_v10 }
 0x4bd   : > { %2993 = vmatpush3.bf16.msra.mxu0 %v3317_v6 }
 0x4be   : > { %2994 = vmatprep.subr.bf16.mxu0 %v3318_v7 }
 0x4c1   : > { %2995 = vmatpush3.bf16.msra.mxu0 %v3319_v9  ;;  %v1610_v9 = vrot.slane %v3772_v35, 5  ;;  %v3330_v35 = vld [vmem:[%s4381_s6 + $0x20] sm:$0xff]  }
 0x4c2   : > { %2996 = vmatprep.subr.bf16.mxu0 %v3320_v11 }
 0x58b   : > { %v1279_v13 = vpop.f32.mrb[4].mxu0 }
 0x58c   : > { %v1285_v14 = vadd.f32 %v1279_v13, %v3711_v8  ;;  %v3114_v15 = vpop.f32.mrb[5].mxu0  ;;  %v3322_v13 = vld [vmem:[%s4384_s9 + $0x60] sm:$0xff]  }
 0x58d   : > { %v1282_v16 = vpop.f32.mrb[6].mxu0  ;;  %v3324_v15 = vld [vmem:[%s4384_s9 + $0x68] sm:$0xff]  }
 0x58e   : > { %v3940_v18 = vadd.f32 %v1286_v12, %v1285_v14  ;;  %v3115_v19 = vpop.f32.mrb[7].mxu0  ;;  %v3321_v12 = vld [vmem:[%s4384_s9 + $0x18] sm:$0xff]   ;;  %v3323_v14 = vld [vmem:[%s4384_s9 + $0x20] sm:$0xff]   ;;  %v3325_v16 = vld [vmem:[%s4384_s9 + $0x28] sm:$0xff]  }
 0x58f   : > { %2997 = vmatpush3.bf16.msra.mxu0 %v3321_v12  ;;  %v3326_v19 = vld [vmem:[%s4384_s9 + $0x70] sm:$0xff]  }
 0x590   : > { %v1289_v20 = vsel %vm683_vm0, %v3940_v18, 0.0  ;;  %2998 = vmatprep.subr.bf16.mxu0 %v3322_v13 }
 0x591   : > { %1290 = vadd.xlane.f32.xlu0 %v1289_v20  ;;  %v3327_v20 = vld [vmem:[%s4384_s9 + $0x30] sm:$0xff]  }
 0x593   : > { %2999 = vmatpush3.bf16.msra.mxu0 %v3323_v14 }
 0x594   : > { %3000 = vmatprep.subr.bf16.mxu0 %v3324_v15 }
 0x597   : > { %3001 = vmatpush3.bf16.msra.mxu0 %v3325_v16 }
 0x598   : > { %3002 = vmatprep.subr.bf16.mxu0 %v3326_v19 }
 0x59b   : > { %3003 = vmatpush3.bf16.msra.mxu0 %v3327_v20  ;;  %v3331_v20 = vld [vmem:[%s4381_s6 + $0x28] sm:$0xff]  }
 0x59c   : > { %3004 = vmatprep.subr.bf16.mxu0 %v3328_v22  ;;  %v3332_v22 = vld [vmem:[%s4381_s6 + $0x30] sm:$0xff]  }
 0x59f   : > { %3005 = vmatpush3.bf16.msra.mxu0 %v3329_v23  ;;  %v3333_v23 = vld [vmem:[%s4381_s6 + $0x38] sm:$0xff]  }
 0x5a0   : > { %3198 = vmatprep.subr.msk.bf16.mxu0 %vm1135_vm12, %v3870_v28 }
 0x5a7   : > { %1371 = vrot.lane.b32.xlu0 %v1364_v45, %s4411_s0 }
 0x5ab   : > { %1369 = vrot.lane.b32.xlu0 %v1360_v50, %s4411_s0 }
 0x61e   : > { %v1291_v8 = vpop.xlane.xlu0 %1290 }
 0x61f   : > { %v1292_v56 = vmul.f32 0.015625, %v1291_v8 }
 0x621   : > { %v1293_v57 = vsub.f32 %v3940_v18, %v1292_v56 }
 0x622   : > { %v1372_v8 = vpop.permute.xlu0 %1371 }
 0x623   : > { %v1294_v58 = vmul.f32 %v1293_v57, %v1293_v57 }
 0x625   : > { %v1295_v59 = vsel %vm683_vm0, %v1294_v58, 0.0 }
 0x626   : > { %1296 = vadd.xlane.f32.xlu1 %v1295_v59  ;;  %v1370_v56 = vpop.permute.xlu0 %1369 }
 0x627   : > { %v1375_v58 = vsel %vm742_vm2, %v1370_v56, %v1372_v8  ;;  %v2964_v56 = vld [vmem:[%s3754_s21 + $0x18] sm:$0xff]  }
 0x637   : > { %1373 = vrot.lane.b32.xlu1 %v1368_v46, %s4411_s0 }
 0x6b3   : > { %v1297_v51 = vpop.xlane.xlu1 %1296 }
 0x6b4   : > { %v1298_v53 = vmul.f32 0.015625, %v1297_v51 }
 0x6b6   : > { %v1299_v54 = vadd.f32 1e-05, %v1298_v53 }
 0x6b8   : > { %3402 = vrsqrt.f32 %v1299_v54 }
 0x6c2   : > { %v3403_v55 = vpop.eup %3402 }
 0x6c3   : > { %v1301_v62 = vmul.f32 %v3403_v55, %v1293_v57  ;;  %v1374_v57 = vpop.permute.xlu1 %1373 }
 0x6c4   : > { %v1376_v31 = vsel %vm742_vm2, %v1372_v8, %v1374_v57  ;;  %v2963_v8 = vld [vmem:[%s3754_s21 + $0x10] sm:$0xff]  }
 0x6c5   : > { %v1304_v0 = vmul.f32 %v1302_v60, %v1301_v62  ;;  %v2947_v57 = vunpack.c.l.bf16 %v2963_v8 }
 0x6c7   : > { %v1307_v1 = vadd.f32 %v1305_v61, %v1304_v0 }
 0x6c9   : > { %v1308_v2 = vpack.c.bf16 %v1307_v1, %v1307_v1 }
 0x6cb   : > { %2788 = vmatmul.mubr.msk.bf16.vlgmr.msra.gmra.mrb[16].mxu1 %vm742_vm2, %v1308_v2 }
 0x6cc   : > { %3124 = vmatprep.mubr.msk.bf16.mxu1 %vm3558_vm1, %v3557_v17  ;;  %3117 = vmatpush3.bf16.msra.mxu1 %v3330_v35 }
 0x6cd   : > { %3118 = vmatprep.subr.bf16.mxu1 %v3557_v17 }
 0x6d0   : > { %3119 = vmatpush3.bf16.msra.mxu1 %v3331_v20 }
 0x6d1   : > { %3120 = vmatprep.subr.bf16.mxu1 %v3557_v17 }
 0x6d4   : > { %3121 = vmatpush3.bf16.msra.mxu1 %v3332_v22 }
 0x6d5   : > { %3122 = vmatprep.subr.bf16.mxu1 %v3557_v17 }
 0x6d8   : > { %3123 = vmatpush3.bf16.msra.mxu1 %v3333_v23 }
 0x6d9   : > { %3128 = vmatprep.subr.bf16.mxu1 %v3748_v21 }
 0x79e   : > { %v1416_v59 = vpop.f32.mrb[16].mxu1 }
 0x79f   : > { %v1417_v30 = vadd.f32 %v1416_v59, %v1375_v58  ;;  %v1418_v32 = vpop.f32.mrb[17].mxu1  ;;  %v2948_v58 = vunpack.c.h.bf16 %v2963_v8  ;;  %v2951_v59 = vunpack.c.l.bf16 %v2964_v56 }
 0x7a0   : > { %v1419_v33 = vadd.f32 %v1418_v32, %v1376_v31  ;;  %v1420_v34 = vpop.f32.mrb[18].mxu1 }
 0x7a1   : > { %v2789_v36 = vmul.f32 -1.702, %v1417_v30  ;;  %v1421_v45 = vpop.f32.mrb[19].mxu1  ;;  %v3270_v31 = vpack.i.bf16 %v2948_v58, %v2947_v57 }
 0x7a2   : > { %v2790_v46 = vmul.f32 -1.702, %v1419_v33 }
 0x7a3   : > { %v1427_v50 = vmul.f32 1.442695, %v2789_v36 }
 0x7a4   : > { %v1429_v51 = vmul.f32 1.442695, %v2790_v46 }
 0x7a5   : > { %3404 = vpow2.f32 %v1427_v50 }
 0x7a6   : > { %3406 = vpow2.f32 %v1429_v51 }
 0x7af   : > { %v3405_v28 = vpop.eup %3404 }
 0x7b0   : > { %v3407_v53 = vpop.eup %3406  ;;  %v1431_v54 = vadd.f32 1.0, %v3405_v28 }
 0x7b1   : > { %v1432_v55 = vadd.f32 1.0, %v3407_v53 }
 0x7b2   : > { %3408 = vrcp.f32 %v1431_v54 }
 0x7b3   : > { %3410 = vrcp.f32 %v1432_v55 }
 0x7bc   : > { %v3409_v60 = vpop.eup %3408 }
 0x7bd   : > { %v3411_v61 = vpop.eup %3410  ;;  %v1437_v62 = vmul.f32 %v3409_v60, %v1417_v30  ;;  %v2952_v30 = vunpack.c.h.bf16 %v2964_v56 }
 0x7be   : > { %v1438_v0 = vmul.f32 %v3411_v61, %v1419_v33 }
 0x7bf   : > { %v1439_v2 = vpack.c.bf16 %v1437_v62, %v1437_v62  ;;  %v3275_v32 = vpack.i.bf16 %v2952_v30, %v2951_v59 }
 0x7c0   : > { %v1440_v1 = vpack.c.bf16 %v1438_v0, %v1438_v0 }
 0x7c2   : > { %1601 = vmatprep.mubr.bf16.mxu0 %v1440_v1 }
 0x7c3   : > { %1602 = vmatmul.mubr.bf16.vlgmr.msra.gmra.mrb[8].mxu0 %v1439_v2 }
 0x7c4   : > { %3149 = vmatpush3.bf16.msra.mxu0 %v3876_v29 }
 0x7c5   : > { %3154 = vmatprep.subr.bf16.mxu0 %v3557_v17 }
 0x896   : > { %v3006_v3 = vpop.f32.mrb[8].mxu0 }
 0x897   : > { %v3007_v4 = vpop.f32.mrb[9].mxu0 }
 0x898   : > { %v3008_v10 = vadd.f32 %v3007_v4, %v3006_v3  ;;  %v3009_v6 = vpop.f32.mrb[10].mxu0 }
 0x899   : > { %v3010_v7 = vpop.f32.mrb[11].mxu0 }
 0x89a   : > { %v1609_v11 = vadd.f32 %v3008_v10, %v3940_v18  ;;  %v4059_v18 = vld [vmem:[%s4385_s10 + $0x6] sm:$0x3f] }
 0x89b   : > { %v1681_v55 = vrot.slane %v4059_v18, %v739_v48 }
 0x89c   : > { %v4047_v12 = vadd.f32 %v1610_v9, %v1609_v11 }
 0x89e   : > { %v1625_v13 = vsel %vm683_vm0, %v4047_v12, 0.0 }
 0x89f   : > { %1626 = vadd.xlane.f32.xlu1 %v1625_v13 }
 0x8b0   : > { %3271 = vrot.lane.b32.xlu1 %v3270_v31, %s4411_s0 }
 0x8b4   : > { %3276 = vrot.lane.b32.xlu1 %v3275_v32, %s4411_s0 }
 0x92c   : > { %v1627_v14 = vpop.xlane.xlu1 %1626 }
 0x92d   : > { %v1628_v15 = vmul.f32 0.015625, %v1627_v14 }
 0x92f   : > { %v1629_v29 = vsub.f32 %v4047_v12, %v1628_v15 }
 0x930   : > { %v3272_v54 = vpop.permute.xlu1 %3271 }
 0x931   : > { %v1630_v16 = vmul.f32 %v1629_v29, %v1629_v29  ;;  %v3273_v2 = vunpack.i.l.bf16 %v3272_v54 }
 0x933   : > { %v1631_v19 = vsel %vm683_vm0, %v1630_v16, 0.0 }
 0x934   : > { %1632 = vadd.xlane.f32.xlu0 %v1631_v19  ;;  %v3277_v60 = vpop.permute.xlu1 %3276 }
 0x935   : > { %v3279_v0 = vunpack.i.h.bf16 %v3277_v60  ;;  %v3278_v1 = vunpack.i.l.bf16 %v3277_v60 }
 0x94a   : > { %1640 = vrot.lane.b32.xlu0 %v4059_v18, %s4411_s0 }
 0x9c1   : > { %v1633_v33 = vpop.xlane.xlu0 %1632 }
 0x9c2   : > { %v1634_v34 = vmul.f32 0.015625, %v1633_v33 }
 0x9c4   : > { %v1635_v36 = vadd.f32 1e-05, %v1634_v34 }
 0x9c5   : > { %v4080_v50 = vpop.permute.xlu0 %1640 }
 0x9c6   : > { %3412 = vrsqrt.f32 %v1635_v36 }
 0x9d0   : > { %v3413_v45 = vpop.eup %3412 }
 0x9d1   : > { %v1637_v46 = vmul.f32 %v3413_v45, %v1629_v29 }
 0x9d3   : > { %v1638_v51 = vmul.f32 %v4059_v18, %v1637_v46 }
 0x9d5   : > { %v1643_v28 = vadd.f32 %v4080_v50, %v1638_v51 }
 0x9d7   : > { %v1644_v53 = vpack.c.bf16 %v1643_v28, %v1643_v28 }
 0x9d9   : > { %3125 = vmatmul.mubr.msk.bf16.vlgmr.msra.gmra.mrb[20].mxu1 %vm742_vm2, %v1644_v53 }
 0x9da   : > { %3129 = vmatpush3.bf16.msra.mxu1 %v3748_v21 }
 0x9db   : > { %3130 = vmatprep.subr.bf16.mxu1 %v3779_v39 }
 0x9de   : > { %3131 = vmatpush3.bf16.msra.mxu1 %v3779_v39  ;;  %v3274_v39 = vunpack.i.h.bf16 %v3272_v54 }
 0x9df   : > { %3132 = vmatprep.subr.bf16.mxu1 %v3788_v40 }
 0x9e2   : > { %3133 = vmatpush3.bf16.msra.mxu1 %v3788_v40 }
 0x9e3   : > { %3134 = vmatprep.subr.bf16.mxu1 %v3795_v41 }
 0x9e6   : > { %3135 = vmatpush3.bf16.msra.mxu1 %v3795_v41 }
 0xaac   : > { %v1720_v61 = vpop.f32.mrb[20].mxu1 }
 0xaad   : > { %v1721_v21 = vadd.f32 %v1720_v61, %v1681_v55  ;;  %v3126_v62 = vpop.f32.mrb[21].mxu1 }
 0xaae   : > { %v1723_v3 = vpop.f32.mrb[22].mxu1 }
 0xaaf   : > { %v1733_v40 = vrot.slane %v1721_v21, %v792_v52  ;;  %v3127_v4 = vpop.f32.mrb[23].mxu1 }
 0xab1   : > { %v1765_v10 = vsub.f32 %v1733_v40, %v3279_v0  ;;  %v1764_v41 = vsub.f32 %v1733_v40, %v3278_v1  ;;  %1739 = vrot.lane.b32.xlu0 %v1733_v40, %s4411_s0  ;;  %v1734_v6 = vmul.f32 %v2947_v57, %v1733_v40  ;;  %v1735_v7 = vmul.f32 %v2948_v58, %v1733_v40 }
 0xab2   : > { %v1736_v48 = vmul.f32 %v2951_v59, %v1733_v40  ;;  %v1737_v9 = vmul.f32 %v2952_v30, %v1733_v40  ;;  %v1762_v11 = vsub.f32 %v1733_v40, %v3273_v2  ;;  %v1763_v13 = vsub.f32 %v1733_v40, %v3274_v39 }
 0xab3   : > { %v1769_v14 = vand.u32 2147483647, %v1765_v10  ;;  %v1768_v15 = vand.u32 2147483647, %v1764_v41  ;;  %v1786_v29 = vpack.c.bf16 %v1735_v7, %v1734_v6 }
 0xab4   : > { %v1787_v16 = vpack.c.bf16 %v1737_v9, %v1736_v48  ;;  %v1766_v19 = vand.u32 2147483647, %v1762_v11  ;;  %v1767_v35 = vand.u32 2147483647, %v1763_v13 }
 0xab5   : > { %3136 = vmatprep.mubr.msk.bf16.mxu1 %vm742_vm2, %v1786_v29  ;;  %v3285_v52 = vpack.i.bf16 %v1769_v14, %v1768_v15 }
 0xab6   : > { %3137 = vmatmul.mubr.msk.bf16.vlgmr.msra.gmra.mrb[24].mxu1 %vm742_vm2, %v1787_v16  ;;  %v3280_v20 = vpack.i.bf16 %v1767_v35, %v1766_v19 }
 0xab7   : > { %3286 = vrot.lane.b32.xlu0 %v3285_v52, %s4411_s0 }
 0xab8   : > { %3281 = vrot.lane.b32.xlu1 %v3280_v20, %s4411_s0 }
 0xb23   : > { %v1740_v22 = vpop.permute.xlu0 %1739 }
 0xb24   : > { %v1742_v23 = vmul.f32 %v2947_v57, %v1740_v22  ;;  %v1743_v8 = vmul.f32 %v2948_v58, %v1740_v22  ;;  %v1744_v56 = vmul.f32 %v2951_v59, %v1740_v22  ;;  %v1745_v31 = vmul.f32 %v2952_v30, %v1740_v22 }
 0xb26   : > { %v1788_v32 = vpack.c.bf16 %v1743_v8, %v1742_v23  ;;  %v1789_v33 = vpack.c.bf16 %v1745_v31, %v1744_v56 }
 0xb28   : > { %3140 = vmatprep.mubr.msk.bf16.mxu1 %vm742_vm2, %v1788_v32 }
 0xb29   : > { %3141 = vmatmul.mubr.msk.bf16.gmra.mrb[28].mxu1 %vm742_vm2, %v1789_v33  ;;  %v3287_v34 = vpop.permute.xlu0 %3286 }
 0xb2a   : > { %v3282_v36 = vpop.permute.xlu1 %3281  ;;  %v3289_v45 = vunpack.i.h.bf16 %v3287_v34  ;;  %v3288_v46 = vunpack.i.l.bf16 %v3287_v34 }
 0xb2b   : > { %v3284_v51 = vunpack.i.h.bf16 %v3282_v36  ;;  %v3283_v28 = vunpack.i.l.bf16 %v3282_v36 }
 0xb2c   : > { %v1791_v54 = vpack.c.bf16 %v3289_v45, %v3288_v46 }
 0xb2d   : > { %v1790_v53 = vpack.c.bf16 %v3284_v51, %v3283_v28 }
 0xb2f   : > { %3144 = vmatprep.mubr.msk.bf16.mxu1 %vm742_vm2, %v1790_v53 }
 0xb31   : > { %3145 = vmatmul.mubr.msk.bf16.gmra.mrb[32].mxu1 %vm742_vm2, %v1791_v54 }
 0xb32   : > { %2287 = vmatprep.mubr.bf16.mxu1 %v3559_v42 }
 0xb89   : > { %v3138_v57 = vpop.f32.mrb[24].mxu1 }
 0xb8a   : > { %v1893_v58 = vmul.f32 0.25, %v3138_v57  ;;  %v1844_v59 = vpop.f32.mrb[25].mxu1 }
 0xb8b   : > { %v1891_v30 = vmul.f32 0.25, %v1844_v59  ;;  %v3139_v55 = vpop.f32.mrb[26].mxu1 }
 0xb8c   : > { %v1905_v60 = vsel %vm1005_vm7, %v1893_v58, -inf  ;;  %v1894_v61 = vmul.f32 0.25, %v3139_v55  ;;  %v1847_v21 = vpop.f32.mrb[27].mxu1 }
 0xb8d   : > { %v1903_v62 = vsel %vm1003_vm8, %v1891_v30, -inf  ;;  %v1892_v0 = vmul.f32 0.25, %v1847_v21  ;;  %v1909_v39 = vsel %vm1011_vm11, %v1905_v60, -inf }
 0xb8e   : > { %v1906_v1 = vsel %vm1006_vm9, %v1894_v61, -inf  ;;  %v1907_v3 = vsel %vm1011_vm11, %v1903_v62, -inf }
 0xb8f   : > { %v1910_v42 = vsel %vm1011_vm11, %v1906_v1, -inf  ;;  %v1904_v2 = vsel %vm1004_vm10, %v1892_v0, -inf }
 0xb90   : > { %v1912_v27 = vmax.f32 %v1909_v39, %v1910_v42  ;;  %v1908_v40 = vsel %vm1011_vm11, %v1904_v2, -inf }
 0xb91   : > { %v1911_v4 = vmax.f32 %v1907_v3, %v1908_v40 }
 0xb93   : > { %v1913_v10 = vmax.f32 %v1911_v4, %v1912_v27 }
 0xb95   : > { %v1914_v24 = vrot.slane %v1913_v10, 4 }
 0xb97   : > { %v1915_v41 = vmax.f32 %v1913_v10, %v1914_v24 }
 0xb99   : > { %v1916_v6 = vrot.slane %v1915_v41, 2 }
 0xb9b   : > { %v1917_v7 = vmax.f32 %v1915_v41, %v1916_v6 }
 0xb9d   : > { %v1918_v49 = vrot.slane %v1917_v7, 1 }
 0xb9f   : > { %v1919_v48 = vmax.f32 %v1917_v7, %v1918_v49 }
 0xba1   : > { %v1920_v9 = vsub.f32 %v1903_v62, %v1919_v48  ;;  %v1921_v11 = vsub.f32 %v1904_v2, %v1919_v48  ;;  %v1922_v13 = vsub.f32 %v1905_v60, %v1919_v48  ;;  %v1923_v14 = vsub.f32 %v1906_v1, %v1919_v48 }
 0xba3   : > { %v1924_v15 = vmul.f32 1.442695, %v1920_v9  ;;  %v1926_v25 = vmul.f32 1.442695, %v1921_v11  ;;  %v1928_v29 = vmul.f32 1.442695, %v1922_v13 }
 0xba4   : > { %v1930_v16 = vmul.f32 1.442695, %v1923_v14 }
 0xba5   : > { %3414 = vpow2.f32 %v1924_v15 }
 0xba6   : > { %3416 = vpow2.f32 %v1926_v25 }
 0xba7   : > { %3418 = vpow2.f32 %v1928_v29 }
 0xba8   : > { %3420 = vpow2.f32 %v1930_v16 }
 0xbaf   : > { %v3415_v19 = vpop.eup %3414 }
 0xbb0   : > { %v3417_v35 = vpop.eup %3416  ;;  %v1932_v52 = vsel %vm1011_vm11, %v3415_v19, 0.0 }
 0xbb1   : > { %v3419_v20 = vpop.eup %3418  ;;  %v1933_v22 = vsel %vm1011_vm11, %v3417_v35, 0.0 }
 0xbb2   : > { %v3421_v23 = vpop.eup %3420  ;;  %v1934_v8 = vadd.f32 %v1933_v22, %v1932_v52  ;;  %v1935_v56 = vsel %vm1011_vm11, %v3419_v20, 0.0 }
 0xbb3   : > { %v1937_v32 = vsel %vm1011_vm11, %v3421_v23, 0.0 }
 0xbb4   : > { %v1936_v31 = vadd.f32 %v1935_v56, %v1934_v8 }
 0xbb6   : > { %v1938_v33 = vadd.f32 %v1937_v32, %v1936_v31 }
 0xbb8   : > { %v1939_v34 = vrot.slane %v1938_v33, 4 }
 0xbba   : > { %v1940_v36 = vadd.f32 %v1939_v34, %v1938_v33 }
 0xbbc   : > { %v1941_v45 = vrot.slane %v1940_v36, 2 }
 0xbbe   : > { %v1942_v46 = vadd.f32 %v1941_v45, %v1940_v36 }
 0xbc0   : > { %v1943_v51 = vrot.slane %v1942_v46, 1 }
 0xbc2   : > { %v1944_v28 = vadd.f32 %v1943_v51, %v1942_v46 }
 0xbc4   : > { %3422 = vrcp.f32 %v1944_v28 }
 0xbce   : > { %v3423_v53 = vpop.eup %3422 }
 0xbcf   : > { %v4123_v54 = vmul.f32 %v3423_v53, %v3419_v20  ;;  %v4125_v57 = vmul.f32 %v3423_v53, %v3421_v23  ;;  %v4127_v58 = vmul.f32 %v3423_v53, %v3415_v19  ;;  %v4129_v59 = vmul.f32 %v3423_v53, %v3417_v35 }
 0xbfc   : > { %v3142_v30 = vpop.f32.mrb[28].mxu1 }
 0xbfd   : > { %v1860_v55 = vpop.f32.mrb[29].mxu1  ;;  %v1897_v49 = vmul.f32 0.25, %v3142_v30 }
 0xbfe   : > { %v3143_v60 = vpop.f32.mrb[30].mxu1  ;;  %v1895_v48 = vmul.f32 0.25, %v1860_v55 }
 0xbff   : > { %v1863_v61 = vpop.f32.mrb[31].mxu1  ;;  %v1898_v29 = vmul.f32 0.25, %v3143_v60 }
 0xc00   : > { %v1896_v19 = vmul.f32 0.25, %v1863_v61 }
 0xc04   : > { %v3146_v21 = vpop.f32.mrb[32].mxu1 }
 0xc05   : > { %v1901_v62 = vmul.f32 0.25, %v3146_v21  ;;  %v1876_v0 = vpop.f32.mrb[33].mxu1 }
 0xc06   : > { %v1899_v1 = vmul.f32 0.25, %v1876_v0  ;;  %v3147_v39 = vpop.f32.mrb[34].mxu1 }
 0xc07   : > { %v1956_v42 = vsub.f32 0.0, %v1901_v62  ;;  %v1902_v2 = vmul.f32 0.25, %v3147_v39  ;;  %v1879_v3 = vpop.f32.mrb[35].mxu1 }
 0xc08   : > { %v1954_v27 = vsub.f32 0.0, %v1899_v1  ;;  %v1900_v40 = vmul.f32 0.25, %v1879_v3 }
 0xc09   : > { %v2837_v4 = vmul.f32 -1.442695, %v1956_v42  ;;  %v1957_v10 = vsub.f32 0.0, %v1902_v2 }
 0xc0a   : > { %v2835_v24 = vmul.f32 -1.442695, %v1954_v27  ;;  %v1955_v41 = vsub.f32 0.0, %v1900_v40 }
 0xc0b   : > { %3424 = vpow2.f32 %v2837_v4  ;;  %v2838_v6 = vmul.f32 -1.442695, %v1957_v10 }
 0xc0c   : > { %3426 = vpow2.f32 %v2835_v24  ;;  %v2836_v7 = vmul.f32 -1.442695, %v1955_v41 }
 0xc0d   : > { %3428 = vpow2.f32 %v2838_v6 }
 0xc0e   : > { %3430 = vpow2.f32 %v2836_v7 }
 0xc0f   : > { %3432 = vtanh.f32 %v1897_v49 }
 0xc10   : > { %3434 = vtanh.f32 %v1895_v48 }
 0xc15   : > { %v3425_v9 = vpop.eup %3424 }
 0xc16   : > { %v3427_v11 = vpop.eup %3426  ;;  %v1972_v13 = vadd.f32 1.0, %v3425_v9 }
 0xc17   : > { %v3429_v14 = vpop.eup %3428  ;;  %v1970_v15 = vadd.f32 1.0, %v3427_v11 }
 0xc18   : > { %v3431_v25 = vpop.eup %3430  ;;  %3436 = vrcp.f32 %v1972_v13  ;;  %v1973_v16 = vadd.f32 1.0, %v3429_v14 }
 0xc19   : > { %3438 = vrcp.f32 %v1970_v15  ;;  %v1971_v35 = vadd.f32 1.0, %v3431_v25  ;;  %v3433_v52 = vpop.eup %3432 }
 0xc1a   : > { %3440 = vrcp.f32 %v1973_v16  ;;  %v3435_v20 = vpop.eup %3434 }
 0xc1b   : > { %3442 = vrcp.f32 %v1971_v35 }
 0xc1c   : > { %3444 = vtanh.f32 %v1898_v29 }
 0xc1d   : > { %3446 = vtanh.f32 %v1896_v19 }
 0xc22   : > { %v3437_v22 = vpop.eup %3436 }
 0xc23   : > { %v3439_v23 = vpop.eup %3438  ;;  %v1984_v8 = vmul.f32 2.0, %v3437_v22 }
 0xc24   : > { %v3441_v56 = vpop.eup %3440  ;;  %v1982_v31 = vmul.f32 2.0, %v3439_v23 }
 0xc25   : > { %v3443_v32 = vpop.eup %3442  ;;  %v1988_v33 = vmul.f32 %v3433_v52, %v1984_v8  ;;  %v1985_v34 = vmul.f32 2.0, %v3441_v56 }
 0xc26   : > { %v3445_v36 = vpop.eup %3444  ;;  %v1986_v45 = vmul.f32 %v3435_v20, %v1982_v31  ;;  %v1983_v46 = vmul.f32 2.0, %v3443_v32  ;;  %v2158_v31 = vrot.slane %v4059_v18, 2 }
 0xc27   : > { %v3447_v51 = vpop.eup %3446  ;;  %v1992_v28 = vmul.f32 %v1988_v33, %v3896_v63  ;;  %v1989_v53 = vmul.f32 %v3445_v36, %v1985_v34 }
 0xc28   : > { %v1987_v30 = vmul.f32 %v3447_v51, %v1983_v46  ;;  %v1990_v55 = vmul.f32 %v1986_v45, %v3892_v44  ;;  %v3334_v44 = vld [vmem:[%s4382_s7 + $0x20] sm:$0xff]  }
 0xc29   : > { %v1996_v60 = vadd.f32 %v1992_v28, %v4123_v54  ;;  %v1993_v61 = vmul.f32 %v1989_v53, %v3899_v5  ;;  %v3336_v5 = vld [vmem:[%s4382_s7 + $0x30] sm:$0xff]   ;;  %v3337_v54 = vld [vmem:[%s4382_s7 + $0x38] sm:$0xff]   ;;  %v3338_v28 = vld [vmem:[%s4383_s8 + $0x40] ss:$8 sps:$4 sm:$0xff]  }
 0xc2a   : > { %v1991_v21 = vmul.f32 %v1987_v30, %v3894_v26  ;;  %v1994_v62 = vadd.f32 %v1990_v55, %v4127_v58  ;;  %v3335_v26 = vld [vmem:[%s4382_s7 + $0x28] sm:$0xff]   ;;  %v2966_v58 = vld [vmem:[%s3929_s28 + $0x18] sm:$0xff]  }
 0xc2b   : > { %v1997_v0 = vadd.f32 %v1993_v61, %v4125_v57  ;;  %v2000_v39 = vmul.f32 0.5, %v1996_v60  ;;  %v2965_v57 = vld [vmem:[%s3929_s28 + $0x10] sm:$0xff]   ;;  %v2959_v40 = vunpack.c.l.bf16 %v2966_v58  ;;  %v2960_v6 = vunpack.c.h.bf16 %v2966_v58  ;;  %v3340_v53 = vld [vmem:[%s4383_s8 + $0x44] ss:$8 sps:$4 sm:$0xff]   ;;  %s3561_s28 = smov [#allocation4]  }
 0xc2c   : > { %v1995_v1 = vadd.f32 %v1991_v21, %v4129_v59  ;;  %v1998_v2 = vmul.f32 0.5, %v1994_v62  ;;  %v2955_v59 = vunpack.c.l.bf16 %v2965_v57  ;;  %v2956_v10 = vunpack.c.h.bf16 %v2965_v57  ;;  %2255 = vmatprep.subr.bf16.mxu1 %v3340_v53  ;;  %v3343_v21 = vld [vmem:[%s4383_s8 + $0x54] ss:$8 sps:$4 sm:$0xff]   ;;  %v3341_v62 = vld [vmem:[%s4383_s8 + $0x50] ss:$8 sps:$4 sm:$0xff]   ;;  %s3464_s26 = sshll.u32 %s3561_s28, 4  ;;  %s3465_s26 = int_to_ptr.vmem [resolvable:$false] %s3464_s26 }
 0xc2d   : > { %v2001_v42 = vmul.f32 0.5, %v1997_v0  ;;  %2256 = vmatpush1.bf16.msra.mxu1 %v3338_v28  ;;  %v3346_v0 = vld [vmem:[%s4383_s8 + $0x64] ss:$8 sps:$4 sm:$0xff]   ;;  %s3466_s1 = scalar_lea.vmem %s3465_s26, 32  ;;  %p3467_p3 = scmp.lt.s32.totalorder %s2609_s19, %s3465_s26 }
 0xc2e   : > { %v1999_v63 = vmul.f32 0.5, %v1995_v1  ;;  %2257 = vmatprep.subr.bf16.mxu1 %v3343_v21  ;;  %v3344_v1 = vld [vmem:[%s4383_s8 + $0x60] ss:$8 sps:$4 sm:$0xff]   ;;  %p3468_p4 = scmp.lt.s32.totalorder %s3466_s1, %s3460_s3 }
 0xc2f   : > { %v2003_v3 = vpack.c.bf16 %v2001_v42, %v2000_v39  ;;  %v3349_v39 = vld [vmem:[%s4383_s8 + $0x74] ss:$8 sps:$4 sm:$0xff]   ;;  %v3347_v42 = vld [vmem:[%s4383_s8 + $0x70] ss:$8 sps:$4 sm:$0xff]  }
 0xc30   : > { %v2002_v27 = vpack.c.bf16 %v1999_v63, %v1998_v2  ;;  %v2241_v2 = vrot.slane %v4059_v18, %v1367_v43  ;;  %v2237_v63 = vrot.slane %v4059_v18, %v1363_v37  ;;  %v2174_v43 = vrot.slane %v4080_v50, 2  ;;  %p3469_p5 = por %p3468_p4, %p3467_p3 }
 0xc31   : > { %2258 = vmatpush1.bf16.msra.mxu1 %v3341_v62 }
 0xc32   : > { %3150 = vmatprep.mubr.msk.bf16.mxu0 %vm1011_vm11, %v2002_v27  ;;  %2259 = vmatprep.subr.bf16.mxu1 %v3346_v0  ;;  %p3470_p7 = pnand %p3469_p5, %p3463_p2 }
 0xc33   : > { %3151 = vmatmul.mubr.msk.bf16.vlgmr.msra.gmra.mrb[12].mxu0 %vm1011_vm11, %v2003_v3  ;;  %v2233_v3 = vrot.slane %v4059_v18, %v1359_v38  ;;  %v3351_v38 = vld [vmem:[%s4384_s9 + $0x80] sm:$0xff]  }
 0xc34   : > { %3162 = vmatprep.mubr.msk.bf16.mxu0 %vm3558_vm1, %v3557_v17  ;;  %3155 = vmatpush3.bf16.msra.mxu0 %v3334_v44 }
 0xc35   : > { %3156 = vmatprep.subr.bf16.mxu0 %v3557_v17  ;;  %2260 = vmatpush1.bf16.msra.mxu1 %v3344_v1 }
 0xc36   : > { %2261 = vmatprep.subr.bf16.mxu1 %v3349_v39  ;;  %v2484_v39 = vrot.slane %v4080_v50, 5  ;;  %v2508_v50 = vld [vmem:[%s4387_s12] sm:$0xff] }
 0xc38   : > { %3157 = vmatpush3.bf16.msra.mxu0 %v3335_v26 }
 0xc39   : > { %3158 = vmatprep.subr.bf16.mxu0 %v3557_v17  ;;  %2262 = vmatpush1.bf16.msra.mxu1 %v3347_v42 }
 0xc3c   : > { %3159 = vmatpush3.bf16.msra.mxu0 %v3336_v5 }
 0xc3d   : > { %3160 = vmatprep.subr.bf16.mxu0 %v3557_v17 }
 0xc40   : > { %3161 = vmatpush3.bf16.msra.mxu0 %v3337_v54  ;;  %v2177_v54 = vrot.slane %v4059_v18, 3  ;;  %v3352_v18 = vld [vmem:[%s4384_s9 + $0xc8] sm:$0xff]  }
 0xc41   : > { %3035 = vmatprep.subr.bf16.mxu0 %v3350_v47  ;;  %v2513_v47 = vld [vmem:[%s4387_s12 + $0x28] sm:$0xff] }
 0xd06   : > { %v3152_v4 = vpop.f32.mrb[12].mxu0 }
 0xd07   : > { %v2044_v24 = vpop.f32.mrb[13].mxu0  ;;  %v2065_v48 = vmul.f32 %v3152_v4, %v2959_v40  ;;  %v3353_v40 = vld [vmem:[%s4384_s9 + $0x88] sm:$0xff]   ;;  %v3354_v4 = vld [vmem:[%s4384_s9 + $0xd0] sm:$0xff]  }
 0xd08   : > { %v2063_v41 = vmul.f32 %v2955_v59, %v2044_v24  ;;  %v3153_v7 = vpop.f32.mrb[14].mxu0  ;;  %v3356_v24 = vld [vmem:[%s4384_s9 + $0xd8] sm:$0xff]  }
 0xd09   : > { %v2047_v49 = vpop.f32.mrb[15].mxu0  ;;  %v2066_v13 = vmul.f32 %v3153_v7, %v2960_v6  ;;  %v2070_v25 = vsel %vm742_vm2, %v2065_v48, 0.0  ;;  %v3358_v6 = vld [vmem:[%s4384_s9 + $0xe0] sm:$0xff]   ;;  %v3361_v48 = vld [vmem:[%s4384_s9 + $0xa8] sm:$0xff]  }
 0xd0a   : > { %v2064_v9 = vmul.f32 %v2956_v10, %v2047_v49  ;;  %v2067_v11 = vsel %vm742_vm2, %v2063_v41, 0.0  ;;  %v3355_v10 = vld [vmem:[%s4384_s9 + $0x90] sm:$0xff]   ;;  %v3357_v41 = vld [vmem:[%s4384_s9 + $0x98] sm:$0xff]   ;;  %v3359_v7 = vld [vmem:[%s4384_s9 + $0xa0] sm:$0xff]  }
 0xd0b   : > { %v2072_v16 = vsel %vm742_vm2, %v2066_v13, 0.0  ;;  %v3360_v49 = vld [vmem:[%s4384_s9 + $0xe8] sm:$0xff]   ;;  %v3364_v13 = vld [vmem:[%s4384_s9 + $0xf8] sm:$0xff]  }
 0xd0c   : > { %v2068_v14 = vsel %vm742_vm2, %v2064_v9, 0.0  ;;  %v3362_v9 = vld [vmem:[%s4384_s9 + $0xf0] sm:$0xff]  }
 0xd0d   : > { %v2069_v15 = vadd.f32 %v2068_v14, %v2067_v11  ;;  %v3363_v11 = vld [vmem:[%s4384_s9 + $0xb0] sm:$0xff]   ;;  %v3365_v14 = vld [vmem:[%s4384_s9 + $0xb8] sm:$0xff]  }
 0xd0f   : > { %v2071_v29 = vadd.f32 %v2070_v25, %v2069_v15 }
 0xd11   : > { %v2073_v19 = vadd.f32 %v2072_v16, %v2071_v29 }
 0xd13   : > { %v2074_v35 = vrot.slane %v2073_v19, 4 }
 0xd15   : > { %v2075_v52 = vadd.f32 %v2074_v35, %v2073_v19 }
 0xd17   : > { %v2076_v20 = vrot.slane %v2075_v52, 2 }
 0xd19   : > { %v2077_v22 = vadd.f32 %v2076_v20, %v2075_v52 }
 0xd1b   : > { %v2078_v23 = vrot.slane %v2077_v22, 1 }
 0xd1d   : > { %v2079_v8 = vadd.f32 %v2078_v23, %v2077_v22 }
 0xd1f   : > { %v2080_v56 = vpack.c.bf16 %v2079_v8, %v2079_v8 }
 0xd21   : > { %3163 = vmatmul.mubr.msk.bf16.vlgmr.msra.gmra.mrb[16].mxu0 %vm742_vm2, %v2080_v56 }
 0xd22   : > { %3036 = vmatpush3.bf16.msra.mxu0 %v3351_v38 }
 0xd23   : > { %3037 = vmatprep.subr.bf16.mxu0 %v3352_v18  ;;  %v2514_v18 = vld [vmem:[%s4387_s12 + $0x30] sm:$0xff] }
 0xd26   : > { %3038 = vmatpush3.bf16.msra.mxu0 %v3353_v40  ;;  %v2515_v40 = vld [vmem:[%s4387_s12 + $0x38] sm:$0xff] }
 0xd27   : > { %3039 = vmatprep.subr.bf16.mxu0 %v3354_v4  ;;  %v3195_v4 = vpack.c.bf16 %v2515_v40, %v2514_v18 }
 0xd2a   : > { %3040 = vmatpush3.bf16.msra.mxu0 %v3355_v10 }
 0xd2b   : > { %3041 = vmatprep.subr.bf16.mxu0 %v3356_v24 }
 0xd2e   : > { %3042 = vmatpush3.bf16.msra.mxu0 %v3357_v41 }
 0xd2f   : > { %3043 = vmatprep.subr.bf16.mxu0 %v3358_v6 }
 0xd32   : > { %3044 = vmatpush3.bf16.msra.mxu0 %v3359_v7 }
 0xd33   : > { %3045 = vmatprep.subr.bf16.mxu0 %v3360_v49 }
 0xd36   : > { %3046 = vmatpush3.bf16.msra.mxu0 %v3361_v48 }
 0xd37   : > { %3047 = vmatprep.subr.bf16.mxu0 %v3362_v9 }
 0xd3a   : > { %3048 = vmatpush3.bf16.msra.mxu0 %v3363_v11 }
 0xd3b   : > { %3049 = vmatprep.subr.bf16.mxu0 %v3364_v13 }
 0xd3e   : > { %3050 = vmatpush3.bf16.msra.mxu0 %v3365_v14 }
 0xdf4   : > { %v2151_v32 = vpop.f32.mrb[16].mxu0 }
 0xdf5   : > { %v2157_v33 = vadd.f32 %v2151_v32, %v4047_v12  ;;  %v3164_v34 = vpop.f32.mrb[17].mxu0 }
 0xdf6   : > { %v2154_v36 = vpop.f32.mrb[18].mxu0 }
 0xdf7   : > { %v4167_v45 = vadd.f32 %v2158_v31, %v2157_v33  ;;  %v3165_v46 = vpop.f32.mrb[19].mxu0 }
 0xdf9   : > { %v2161_v51 = vsel %vm683_vm0, %v4167_v45, 0.0 }
 0xdfa   : > { %2162 = vadd.xlane.f32.xlu1 %v2161_v51 }
 0xe0b   : > { %2246 = vrot.lane.b32.xlu1 %v2241_v2, %s4411_s0 }
 0xe0f   : > { %2242 = vrot.lane.b32.xlu1 %v2233_v3, %s4411_s0  ;;  %v2487_v3 = vld [vmem:[%s4386_s11] sm:$0x1] }
 0xe87   : > { %v2163_v12 = vpop.xlane.xlu1 %2162 }
 0xe88   : > { %v2164_v30 = vmul.f32 0.015625, %v2163_v12 }
 0xe8a   : > { %v2165_v55 = vsub.f32 %v4167_v45, %v2164_v30 }
 0xe8b   : > { %v2247_v15 = vpop.permute.xlu1 %2246 }
 0xe8c   : > { %v2166_v60 = vmul.f32 %v2165_v55, %v2165_v55 }
 0xe8e   : > { %v2167_v61 = vsel %vm683_vm0, %v2166_v60, 0.0 }
 0xe8f   : > { %2168 = vadd.xlane.f32.xlu0 %v2167_v61  ;;  %v2243_v25 = vpop.permute.xlu1 %2242 }
 0xea5   : > { %2244 = vrot.lane.b32.xlu0 %v2237_v63, %s4411_s0 }
 0xf1c   : > { %v2169_v27 = vpop.xlane.xlu0 %2168 }
 0xf1d   : > { %v2170_v44 = vmul.f32 0.015625, %v2169_v27 }
 0xf1f   : > { %v2171_v26 = vadd.f32 1e-05, %v2170_v44 }
 0xf20   : > { %v2245_v29 = vpop.permute.xlu0 %2244 }
 0xf21   : > { %3448 = vrsqrt.f32 %v2171_v26  ;;  %v2248_v16 = vsel %vm742_vm2, %v2243_v25, %v2245_v29  ;;  %v2249_v52 = vsel %vm742_vm2, %v2245_v29, %v2247_v15 }
 0xf2b   : > { %v3449_v5 = vpop.eup %3448 }
 0xf2c   : > { %v2173_v37 = vmul.f32 %v3449_v5, %v2165_v55 }
 0xf2e   : > { %v2176_v57 = vmul.f32 %v2174_v43, %v2173_v37  ;;  %v2510_v43 = vld [vmem:[%s4387_s12 + $0x10] sm:$0xff] }
 0xf30   : > { %v2179_v58 = vadd.f32 %v2177_v54, %v2176_v57  ;;  %v3560_v54 = vmov 0.0|0.0   ;;  %v2511_v57 = vld [vmem:[%s4387_s12 + $0x18] sm:$0xff] }
 0xf31   : > { %3185 = vmatprep.subr.bf16.mxu0 %v3560_v54 }
 0xf32   : > { %v2180_v59 = vpack.c.bf16 %v2179_v58, %v2179_v58  ;;  %v3189_v58 = vpack.c.bf16 %v2511_v57, %v2510_v43 }
 0xf34   : > { %2870 = vmatmul.mubr.msk.bf16.vlgmr.msra.gmra.mrb[36].mxu1 %vm742_vm2, %v2180_v59  ;;  %v2512_v59 = vld [vmem:[%s4387_s12 + $0x20] sm:$0xff] }
 0xf35   : > { %v3192_v38 = vpack.c.bf16 %v2513_v47, %v2512_v59 }
0x1007   : > { %v2289_v19 = vpop.f32.mrb[36].mxu1 }
0x1008   : > { %v2290_v35 = vadd.f32 %v2289_v19, %v2248_v16  ;;  %v2291_v20 = vpop.f32.mrb[37].mxu1 }
0x1009   : > { %v2292_v22 = vadd.f32 %v2291_v20, %v2249_v52  ;;  %v2293_v23 = vpop.f32.mrb[38].mxu1 }
0x100a   : > { %v2871_v8 = vmul.f32 -1.702, %v2290_v35  ;;  %v2294_v56 = vpop.f32.mrb[39].mxu1 }
0x100b   : > { %v2872_v31 = vmul.f32 -1.702, %v2292_v22 }
0x100c   : > { %v2300_v32 = vmul.f32 1.442695, %v2871_v8 }
0x100d   : > { %v2302_v33 = vmul.f32 1.442695, %v2872_v31 }
0x100e   : > { %3450 = vpow2.f32 %v2300_v32 }
0x100f   : > { %3452 = vpow2.f32 %v2302_v33 }
0x1018   : > { %v3451_v34 = vpop.eup %3450 }
0x1019   : > { %v3453_v36 = vpop.eup %3452  ;;  %v2304_v46 = vadd.f32 1.0, %v3451_v34 }
0x101a   : > { %v2305_v51 = vadd.f32 1.0, %v3453_v36 }
0x101b   : > { %3454 = vrcp.f32 %v2304_v46 }
0x101c   : > { %3456 = vrcp.f32 %v2305_v51 }
0x1025   : > { %v3455_v28 = vpop.eup %3454 }
0x1026   : > { %v3457_v53 = vpop.eup %3456  ;;  %v2310_v12 = vmul.f32 %v3455_v28, %v2290_v35 }
0x1027   : > { %v2311_v30 = vmul.f32 %v3457_v53, %v2292_v22 }
0x1028   : > { %v2312_v60 = vpack.c.bf16 %v2310_v12, %v2310_v12 }
0x1029   : > { %v2313_v55 = vpack.c.bf16 %v2311_v30, %v2311_v30 }
0x102b   : > { %2475 = vmatprep.mubr.bf16.mxu0 %v2313_v55 }
0x102c   : > { %2476 = vmatmul.mubr.bf16.vlgmr.msra.gmra.mrb[20].mxu0 %v2312_v60 }
0x102d   : > { %3182 = vmatprep.mubr.msk.f32.mxu0 %vm3558_vm1, %v3557_v17 }
0x10ff   : > { %v3051_v61 = vpop.f32.mrb[20].mxu0 }
0x1100   : > { %v3052_v21 = vpop.f32.mrb[21].mxu0 }
0x1101   : > { %v3053_v62 = vadd.f32 %v3052_v21, %v3051_v61  ;;  %v3054_v0 = vpop.f32.mrb[22].mxu0 }
0x1102   : > { %v3055_v1 = vpop.f32.mrb[23].mxu0 }
0x1103   : > { %v2483_v42 = vadd.f32 %v3053_v62, %v4167_v45  ;;  %v2509_v45 = vld [vmem:[%s4387_s12 + $0x8] sm:$0xff] }
0x1104   : > { %v3186_v37 = vpack.c.bf16 %v2509_v45, %v2508_v50 }
0x1105   : > { %v2486_v2 = vadd.f32 %v2484_v39, %v2483_v42 }
0x1106   : > { %3187 = vmatpush3.bf16.msra.mxu0 %v3186_v37 }
0x1107   : > { %v2488_v63 = vsel %vm683_vm0, %v2486_v2, 0.0  ;;  %3188 = vmatprep.subr.bf16.mxu0 %v3560_v54 }
0x1108   : > { %2489 = vadd.xlane.f32.xlu0 %v2488_v63 }
0x110a   : > { %3190 = vmatpush3.bf16.msra.mxu0 %v3189_v58 }
0x110b   : > { %3191 = vmatprep.subr.bf16.mxu0 %v3560_v54 }
0x110e   : > { %3193 = vmatpush3.bf16.msra.mxu0 %v3192_v38 }
0x110f   : > { %3194 = vmatprep.subr.bf16.mxu0 %v3560_v54 }
0x1112   : > { %3196 = vmatpush3.bf16.msra.mxu0 %v3195_v4 }
0x111e   : > { %2503 = vrot.lane.b32.xlu0 %v2487_v3, %s4411_s0 }
0x1195   : > { %v2490_v17 = vpop.xlane.xlu0 %2489 }
0x1196   : > { %v2491_v27 = vmul.f32 0.015625, %v2490_v17 }
0x1198   : > { %v2492_v44 = vsub.f32 %v2486_v2, %v2491_v27 }
0x1199   : > { %v2504_v49 = vpop.permute.xlu0 %2503 }
0x119a   : > { %v2493_v26 = vmul.f32 %v2492_v44, %v2492_v44 }
0x119c   : > { %v2494_v5 = vsel %vm683_vm0, %v2493_v26, 0.0 }
0x119d   : > { %2495 = vadd.xlane.f32.xlu1 %v2494_v5 }
0x122a   : > { %v2496_v10 = vpop.xlane.xlu1 %2495 }
0x122b   : > { %v2497_v24 = vmul.f32 0.015625, %v2496_v10 }
0x122d   : > { %v2498_v41 = vadd.f32 1e-05, %v2497_v24 }
0x122f   : > { %3458 = vrsqrt.f32 %v2498_v41 }
0x1239   : > { %v3459_v6 = vpop.eup %3458 }
0x123a   : > { %v2500_v7 = vmul.f32 %v3459_v6, %v2492_v44 }
0x123c   : > { %v2501_v48 = vmul.f32 %v2500_v7, %v2487_v3 }
0x123e   : > { %v2506_v9 = vadd.f32 %v2504_v49, %v2501_v48 }
0x1240   : > { %3183 = vmatmul.mubr.msk.f32.vlgmr.msra.gmra.mrb[24].mxu0 %vm742_vm2, %v2506_v9  ;;  %2507 = vst.msk [vmem:[%s643_s20] sm:$0x1] %vm683_vm0, %v2506_v9 }
0x1241   : > { %3473 = shalt.err (!%p3470_p7)
}
0x1242   : > { %s3474_s2 = scalar_lea.hbm %s4305_s23, 16  ;;  %s3478_s22 = scalar_lea.hbm %s4388_s13, 32 }
0x1243   : > { %p3475_p10 = scmp.ne.s32.totalorder %s4305_s23, %s3474_s2  ;;  %p3479_p13 = scmp.lt.u32.totalorder %s4305_s23, %s4388_s13 }
0x1244   : > { %p3480_p0 = scmp.lt.u32.totalorder %s3478_s22, %s3474_s2  ;;  %p3482_p2 = scmp.lt.u32.totalorder %s3474_s2, %s4305_s23 }
0x1245   : > { %p3476_p11 = pnand %p3475_p10, %p3681_p6 }
0x1246   : > { %p3481_p1 = por %p3480_p0, %p3479_p13 }
0x1247   : > { %p3477_p12 = pneg %p3476_p11 }
0x1248   : > { %p3483_p3 = por %p3482_p2, %p3481_p1 }
0x124a   : > { %p3484_p4 = pnand %p3483_p3, %p3477_p12 }
0x124c   : > { %3487 = shalt.err (!%p3484_p4)
}
0x124d   : > { %3199 = dma.vmem_to_hbm [thread:$0]  (%p3681_p6), %s2609_s19, 16, %s4305_s23, %s2592_s27   ;;  %vm2589_vm13 = vcmask 57344  }
0x124e   : > { %s649_s3 = scalar_lea.vmem [#allocation6], %s3743_s25  ;;  %s4331_s20 = scalar_lea.hbm %s4389_s14, %s2922_s18 }
0x124f   : > { %s2621_s26 = sshll.u32 %s649_s3, 4  ;;  %s2596_s2 = scalar_lea.sflag [#allocation7], %s3743_s25  ;;  %s4333_s26 = int_to_ptr.vmem [resolvable:$true] %s2621_s26 }
0x1250   : > { %s3488_s22 = scalar_lea.vmem %s4333_s26, 16  ;;  %s3562_s17 = smov [#allocation6]  }
0x1251   : > { %p3489_p5 = scmp.ne.s32.totalorder %s4333_s26, %s3488_s22  ;;  %s3492_s23 = sshll.u32 %s3562_s17, 4  ;;  %s3493_s23 = int_to_ptr.vmem [resolvable:$false] %s3492_s23 }
0x1252   : > { %s3494_s19 = scalar_lea.vmem %s3493_s23, 32  ;;  %p3495_p11 = scmp.lt.s32.totalorder %s4333_s26, %s3493_s23 }
0x1253   : > { %p3490_p7 = pnand %p3489_p5, %p3681_p6  ;;  %p3496_p12 = scmp.lt.s32.totalorder %s3494_s19, %s3488_s22 }
0x1255   : > { %p3491_p10 = pneg %p3490_p7  ;;  %p3497_p13 = por %p3496_p12, %p3495_p11 }
0x1257   : > { %p3498_p0 = pnand %p3497_p13, %p3491_p10 }
0x1313   : > { %v2585_v11 = vpop.f32.mrb[24].mxu0 }
0x1314   : > { %2590 = vst.msk [vmem:[%s649_s3] sm:$0x1] %vm2589_vm13, %v2585_v11  ;;  %v3184_v13 = vpop.f32.mrb[25].mxu0 }
0x1315   : > { %3501 = shalt.err (!%p3498_p0)
}
0x1316   : > { %s3502_s25 = scalar_lea.hbm %s4331_s20, 16  ;;  %s3506_s0 = scalar_lea.hbm %s4389_s14, 32 }
0x1317   : > { %p3503_p1 = scmp.ne.s32.totalorder %s4331_s20, %s3502_s25  ;;  %p3507_p4 = scmp.lt.u32.totalorder %s4331_s20, %s4389_s14 }
0x1318   : > { %p3508_p5 = scmp.lt.u32.totalorder %s3506_s0, %s3502_s25  ;;  %p3510_p10 = scmp.lt.u32.totalorder %s3502_s25, %s4331_s20 }
0x1319   : > { %p3504_p2 = pnand %p3503_p1, %p3681_p6 }
0x131a   : > { %p3509_p7 = por %p3508_p5, %p3507_p4 }
0x131b   : > { %p3505_p3 = pneg %p3504_p2 }
0x131c   : > { %p3511_p11 = por %p3510_p10, %p3509_p7 }
0x131e   : > { %p3512_p12 = pnand %p3511_p11, %p3505_p3 }
0x1320   : > { %3515 = shalt.err (!%p3512_p12)
}
0x1321   : > { %3200 = dma.vmem_to_hbm [thread:$0]  (%p3681_p6), %s4333_s26, 16, %s4331_s20, %s2596_s2  }
0x1322 PF: > { %s2633_s21 = sand.u32 1, %s3542_s29   ;;  %p3204_p13 = pnand %p2742_p9, %p3685_p8 }
0x1323   : > { %s2634_s22 = scalar_lea.sflag [#allocation5], %s2633_s21 }
0x1324   : > { %3533 = dma.done.wait (!%p3204_p13), %s2634_s22, 16  }
0x1325   : > { %3535 = vsyncadd (!%p3204_p13), %s2634_s22, 4294967280  ;;  %s2642_s17 = scalar_lea.sflag [#allocation7], %s2633_s21 }
0x1326   : > { %3537 = dma.done.wait (!%p3204_p13), %s2642_s17, 16  }
0x1327   : > { %3539 = vsyncadd (!%p3204_p13), %s2642_s17, 4294967280  ;;  %s4413_s16 = sld [smem:[#allocation10_spill]]  ;;  %s4414_s24 = sld [smem:[#allocation11_spill]] }
0x1328   : > { %s4415_s29 = smov %s3546_s30  ;;  %s4416_s30 = smov %s3550_s15 }
0x132d   : > { %p28_p6 = scmp.ge.s32.totalorder %s4413_s16, 4   ;;  %s4417_s15 = smov %s4414_s24 }
0x132f   :  { %30 = sbr.rel (!%p28_p6) target bundleno = 10 (0xa), region = 229 }
0x1336   :  { %2646 = vsyncpa [#allocation5], 1 }
0x1337   :  { %2648 = vsyncpa [#allocation5 + $0x1], 1 }
0x1338   :  { %2649 = vsyncpa [#allocation7], 1 }
0x1339   :  { %2651 = vsyncpa [#allocation7 + $0x1], 1 }

</bundles_post_ra>
